<compile_context>
chip_gen: v7x
topology: tpu7x:2x2x1
jax: 0.10.0
libtpu: 0.0.40
codegen_flags: <defaults>
</compile_context>

<pallas_src>
import math
from functools import partial

import jax
import jax.numpy as jnp
from jax.experimental import pallas as pl
from jax.experimental.pallas import tpu as pltpu

# ---- model hyperparameters (small, consistent with module __init__) ----
D_MODEL = 32
D_HIDDEN = 64
N_HEADS = 4
HEAD_D = D_MODEL // N_HEADS
INV_SCALE = 1.0 / math.sqrt(D_MODEL)     # module scales by sqrt(d_model)
LN_EPS = 1e-5
NEG_INF = -1e10

# row indices of the packed (9, D_MODEL) vector table
ROW_BO1, ROW_BO2, ROW_BF2, ROW_G1, ROW_B1, ROW_G2, ROW_B2, ROW_G3, ROW_B3 = range(9)


# ----------------------------- kernel helpers -----------------------------
def _layernorm(x, gamma, beta):
    # PyTorch LayerNorm: biased variance, eps inside sqrt
    mean = jnp.mean(x, axis=-1, keepdims=True)
    var = jnp.mean((x - mean) ** 2, axis=-1, keepdims=True)
    return (x - mean) * jax.lax.rsqrt(var + LN_EPS) * gamma + beta


def _softmax(x):
    m = jnp.max(x, axis=-1, keepdims=True)
    e = jnp.exp(x - m)
    inv = pl.reciprocal(jnp.sum(e, axis=-1, keepdims=True), approx=False)
    return e * inv


def _mha_core(q, k, v, wo, mask_add, batch, t_q, t_k):
    """Multi-head attention with static (Python) batch/head loops.

    q: (B*Tq, D), k/v: (B*Tk, D), all already projected (no bias).
    Returns (projected attention result (B*Tq, D) WITHOUT output bias,
             attention maps packed as (B*Tq, H*Tk)).

    The per-head hv tiles are lane-concatenated and projected with ONE
    (Tq, D)@(D, D) matmul per batch (one MXU launch instead of H tiny ones).
    """
    outs, maps_all = [], []
    for b in range(batch):
        qb = q[b * t_q:(b + 1) * t_q, :]
        kb = k[b * t_k:(b + 1) * t_k, :]
        vb = v[b * t_k:(b + 1) * t_k, :]
        hvs, maps = [], []
        for h in range(N_HEADS):
            lo, hi = h * HEAD_D, (h + 1) * HEAD_D
            s = jax.lax.dot_general(
                qb[:, lo:hi], kb[:, lo:hi], (((1,), (1,)), ((), ())),
                preferred_element_type=jnp.float32) * INV_SCALE
            if mask_add is not None:
                s = s + mask_add                      # additive bias, one vadd
            a = _softmax(s)
            maps.append(a)
            hvs.append(jnp.dot(a, vb[:, lo:hi],
                               preferred_element_type=jnp.float32))
        hv = jnp.concatenate(hvs, axis=-1)            # (Tq, D) head-major lanes
        outs.append(jnp.dot(hv, wo, preferred_element_type=jnp.float32))
        maps_all.append(jnp.concatenate(maps, axis=-1))
    return jnp.concatenate(outs, axis=0), jnp.concatenate(maps_all, axis=0)


# ------------------------------- the kernel -------------------------------
def decoder_layer_kernel(batch, t_tgt, t_src,
                         tgt_ref, src_ref, maskadd_ref,
                         w1_ref, w2_ref, wf1_ref, wf2_ref, vecd_ref, bf1_ref,
                         out_ref):
    D = D_MODEL
    tgt = tgt_ref[...]            # (B*Tt, D)
    src = src_ref[...]            # (B*Ts, D)
    mask_add = maskadd_ref[...]   # (Tt, Tt): 0 = keep, -1e10 = masked

    vecs = vecd_ref[...]          # (9, D) packed bias / LN table
    bo1 = vecs[ROW_BO1:ROW_BO1 + 1, :]
    bo2 = vecs[ROW_BO2:ROW_BO2 + 1, :]
    bf2 = vecs[ROW_BF2:ROW_BF2 + 1, :]
    g1 = vecs[ROW_G1:ROW_G1 + 1, :]
    b1 = vecs[ROW_B1:ROW_B1 + 1, :]
    g2 = vecs[ROW_G2:ROW_G2 + 1, :]
    b2 = vecs[ROW_B2:ROW_B2 + 1, :]
    g3 = vecs[ROW_G3:ROW_G3 + 1, :]
    b3 = vecs[ROW_B3:ROW_B3 + 1, :]
    bf1 = bf1_ref[...]            # (1, D_HIDDEN)

    # --- masked self-attention (packed [Wq|Wk|Wv|Wo] slab) + residual + LN1 ---
    w1 = w1_ref[...]                                              # (D, 4D)
    qkv1 = jnp.dot(tgt, w1[:, 0:3 * D], preferred_element_type=jnp.float32)
    attn1, dec_maps = _mha_core(qkv1[:, 0:D], qkv1[:, D:2 * D],
                                qkv1[:, 2 * D:3 * D], w1[:, 3 * D:4 * D],
                                mask_add, batch, t_tgt, t_tgt)
    # TODO(synk): nn.Dropout(0.2) treated as identity (eval mode)
    x = _layernorm(tgt + attn1 + bo1, g1, b1)

    # --- cross-attention (packed [Wq|Wk|Wv|Wo] slab, no mask) + resid + LN2 ---
    w2 = w2_ref[...]                                              # (D, 4D)
    q2 = jnp.dot(x, w2[:, 0:D], preferred_element_type=jnp.float32)
    kv2 = jnp.dot(src, w2[:, D:3 * D], preferred_element_type=jnp.float32)
    attn2, cross_maps = _mha_core(q2, kv2[:, 0:D], kv2[:, D:2 * D],
                                  w2[:, 3 * D:4 * D], None,
                                  batch, t_tgt, t_src)
    x = _layernorm(x + attn2 + bo2, g2, b2)

    # --- position-wise feed-forward + residual + LN3 ---
    h = jnp.maximum(
        jnp.dot(x, wf1_ref[...], preferred_element_type=jnp.float32) + bf1, 0.0)
    ff = jnp.dot(h, wf2_ref[...], preferred_element_type=jnp.float32) + bf2
    y = _layernorm(x + ff, g3, b3)

    # Single packed, lane-dense output slab: [layer out | dec maps | cross maps]
    # -> one unmasked full-width store / one writeback DMA.
    out_ref[...] = jnp.concatenate([y, dec_maps, cross_maps], axis=-1)


# ------------------------------ host wrappers ------------------------------
def pack_params(params, tgt_mask):
    """One-time host-side packing of static tensors (call once, outside jit loop)."""
    (wq1, wk1, wv1, wo1, bo1,
     wq2, wk2, wv2, wo2, bo2,
     g1, b1, g2, b2,
     wf1, bf1, wf2, bf2,
     g3, b3) = params
    return {
        "w1": jnp.concatenate([wq1, wk1, wv1, wo1], axis=1),      # (D, 4D) = 128 lanes
        "w2": jnp.concatenate([wq2, wk2, wv2, wo2], axis=1),      # (D, 4D) = 128 lanes
        "wf1": wf1,                                               # (D, Hd)
        "wf2": wf2,                                               # (Hd, D)
        "vecd": jnp.concatenate([bo1, bo2, bf2, g1, b1, g2, b2, g3, b3],
                                axis=0),                          # (9, D)
        "bf1": bf1,                                               # (1, Hd)
        "mask_add": (1.0 - tgt_mask) * NEG_INF,                   # additive bias
    }


@jax.jit
def decoder_layer(tgt, src, packed):
    B, Tt, D = tgt.shape
    _, Ts, _ = src.shape
    H = N_HEADS

    tgt2d = tgt.reshape(B * Tt, D)
    src2d = src.reshape(B * Ts, D)

    inputs = (tgt2d, src2d, packed["mask_add"],
              packed["w1"], packed["w2"], packed["wf1"], packed["wf2"],
              packed["vecd"], packed["bf1"])

    def full_spec(shape):
        nd = len(shape)
        return pl.BlockSpec(shape, lambda i, nd=nd: (0,) * nd)

    out_w = D + H * Tt + H * Ts          # 32 + 32 + 64 = 128 at these shapes
    out_shape = jax.ShapeDtypeStruct((B * Tt, out_w), jnp.float32)

    # Single grid step: at this problem size per-step pipeline overhead and
    # per-input double-buffering dominate; the grid is a serial loop on
    # single-TC chips anyway.
    packed2d = pl.pallas_call(
        partial(decoder_layer_kernel, B, Tt, Ts),
        out_shape=out_shape,
        grid_spec=pltpu.PrefetchScalarGridSpec(
            num_scalar_prefetch=0,
            grid=(1,),
            in_specs=[full_spec(x.shape) for x in inputs],
            out_specs=full_spec(out_shape.shape),
        ),
        compiler_params=pltpu.CompilerParams(
            dimension_semantics=("arbitrary",)),
    )(*inputs)

    out = packed2d[:, 0:D].reshape(B, Tt, D)
    dec_map = packed2d[:, D:D + H * Tt].reshape(B, Tt, H, Tt).transpose(0, 2, 1, 3)
    cross_map = packed2d[:, D + H * Tt:].reshape(B, Tt, H, Ts).transpose(0, 2, 1, 3)
    return out, dec_map, cross_map


# ---------------------------- pure-JAX reference ----------------------------
def _ref_mha(xq, xkv, wq, wk, wv, wo, bo, mask):
    B, Tq, D = xq.shape
    Tk = xkv.shape[1]
    q = (xq @ wq).reshape(B, Tq, N_HEADS, HEAD_D).transpose(0, 2, 1, 3)
    k = (xkv @ wk).reshape(B, Tk, N_HEADS, HEAD_D).transpose(0, 2, 1, 3)
    v = (xkv @ wv).reshape(B, Tk, N_HEADS, HEAD_D).transpose(0, 2, 1, 3)
    s = jnp.einsum('bhqd,bhkd->bhqk', q, k) / math.sqrt(D_MODEL)
    if mask is not None:
        s = jnp.where(mask == 0, NEG_INF, s)
    a = jax.nn.softmax(s, axis=-1)
    r = jnp.einsum('bhqk,bhkd->bhqd', a, v).transpose(0, 2, 1, 3).reshape(B, Tq, D)
    return r @ wo + bo, a


def _ref_ln(x, g, b):
    mean = jnp.mean(x, axis=-1, keepdims=True)
    var = jnp.mean((x - mean) ** 2, axis=-1, keepdims=True)
    return (x - mean) / jnp.sqrt(var + LN_EPS) * g + b


def reference(tgt, src, mask, params):
    (wq1, wk1, wv1, wo1, bo1,
     wq2, wk2, wv2, wo2, bo2,
     g1, b1, g2, b2,
     wf1, bf1, wf2, bf2,
     g3, b3) = params
    a1, dmap = _ref_mha(tgt, tgt, wq1, wk1, wv1, wo1, bo1, mask)
    x = _ref_ln(tgt + a1, g1, b1)
    a2, cmap = _ref_mha(x, src, wq2, wk2, wv2, wo2, bo2, None)
    x = _ref_ln(x + a2, g2, b2)
    ff = jnp.maximum(x @ wf1 + bf1, 0.0) @ wf2 + bf2
    x = _ref_ln(x + ff, g3, b3)
    return x, dmap, cmap


# ----------------------------------- main -----------------------------------
if __name__ == "__main__":
    B, Tt, Ts = 2, 8, 16
    D, Hd = D_MODEL, D_HIDDEN

    key = jax.random.PRNGKey(0)
    ks = jax.random.split(key, 20)

    def init(k, shape, scale=0.1):
        return jax.random.normal(k, shape, dtype=jnp.float32) * scale

    params = [
        # MHA 1 (masked self-attention)
        init(ks[0], (D, D)), init(ks[1], (D, D)), init(ks[2], (D, D)),
        init(ks[3], (D, D)), init(ks[4], (1, D)),
        # MHA 2 (cross-attention)
        init(ks[5], (D, D)), init(ks[6], (D, D)), init(ks[7], (D, D)),
        init(ks[8], (D, D)), init(ks[9], (1, D)),
        # LayerNorm 1 & 2 (PyTorch default init: gamma=1, beta=0)
        jnp.ones((1, D), jnp.float32), jnp.zeros((1, D), jnp.float32),
        jnp.ones((1, D), jnp.float32), jnp.zeros((1, D), jnp.float32),
        # FFN
        init(ks[10], (D, Hd)), init(ks[11], (1, Hd)),
        init(ks[12], (Hd, D)), init(ks[13], (1, D)),
        # LayerNorm 3
        jnp.ones((1, D), jnp.float32), jnp.zeros((1, D), jnp.float32),
    ]

    tgt = jax.random.normal(ks[14], (B, Tt, D), dtype=jnp.float32)
    src = jax.random.normal(ks[15], (B, Ts, D), dtype=jnp.float32)
    # causal target mask (Tt, Tt): 1 = keep, 0 = mask out
    tgt_mask = jnp.tril(jnp.ones((Tt, Tt), jnp.float32))

    packed = pack_params(params, tgt_mask)     # one-time static packing
    out, dec_map, cross_map = decoder_layer(tgt, src, packed)
    jax.block_until_ready((out, dec_map, cross_map))

    ref_out, ref_dmap, ref_cmap = reference(tgt, src, tgt_mask, params)
    assert out.shape == (B, Tt, D)
    assert dec_map.shape == (B, N_HEADS, Tt, Tt)
    assert cross_map.shape == (B, N_HEADS, Tt, Ts)
    assert jnp.allclose(out, ref_out, atol=1e-4, rtol=1e-4)
    assert jnp.allclose(dec_map, ref_dmap, atol=1e-5, rtol=1e-4)
    assert jnp.allclose(cross_map, ref_cmap, atol=1e-5, rtol=1e-4)

    print("KERNEL_OK")
</pallas_src>

<mosaic_0001>
module attributes {stable_mosaic.version = 11 : i64} {
  func.func @decoder_layer_kernel(%arg0: i32, %arg1: memref<16x32xf32, #tpu.memory_space<vmem>>, %arg2: memref<32x32xf32, #tpu.memory_space<vmem>>, %arg3: memref<8x8xf32, #tpu.memory_space<vmem>>, %arg4: memref<32x128xf32, #tpu.memory_space<vmem>>, %arg5: memref<32x128xf32, #tpu.memory_space<vmem>>, %arg6: memref<32x64xf32, #tpu.memory_space<vmem>>, %arg7: memref<64x32xf32, #tpu.memory_space<vmem>>, %arg8: memref<9x32xf32, #tpu.memory_space<vmem>>, %arg9: memref<1x64xf32, #tpu.memory_space<vmem>>, %arg10: memref<16x128xf32, #tpu.memory_space<vmem>>) attributes {dimension_semantics = [#tpu.dimension_semantics<arbitrary>], iteration_bounds = array<i64: 1>, scalar_prefetch = 0 : i64, scratch_operands = 0 : i64, tpu.core_type = #tpu.core_type<tc>, window_params = [{pipeline_mode = #tpu.pipeline_mode<synchronous>, transform_indices = @transform_0, window_bounds = array<i64: 16, 32>}, {pipeline_mode = #tpu.pipeline_mode<synchronous>, transform_indices = @transform_1, window_bounds = array<i64: 32, 32>}, {pipeline_mode = #tpu.pipeline_mode<synchronous>, transform_indices = @transform_2, window_bounds = array<i64: 8, 8>}, {pipeline_mode = #tpu.pipeline_mode<synchronous>, transform_indices = @transform_3, window_bounds = array<i64: 32, 128>}, {pipeline_mode = #tpu.pipeline_mode<synchronous>, transform_indices = @transform_4, window_bounds = array<i64: 32, 128>}, {pipeline_mode = #tpu.pipeline_mode<synchronous>, transform_indices = @transform_5, window_bounds = array<i64: 32, 64>}, {pipeline_mode = #tpu.pipeline_mode<synchronous>, transform_indices = @transform_6, window_bounds = array<i64: 64, 32>}, {pipeline_mode = #tpu.pipeline_mode<synchronous>, transform_indices = @transform_7, window_bounds = array<i64: 9, 32>}, {pipeline_mode = #tpu.pipeline_mode<synchronous>, transform_indices = @transform_8, window_bounds = array<i64: 1, 64>}, {pipeline_mode = #tpu.pipeline_mode<synchronous>, transform_indices = @transform_9, window_bounds = array<i64: 16, 128>}]} {
    %c0 = arith.constant 0 : index
    %c0_0 = arith.constant 0 : index
    %0 = vector.load %arg1[%c0, %c0_0] : memref<16x32xf32, #tpu.memory_space<vmem>>, vector<16x32xf32>
    %c0_1 = arith.constant 0 : index
    %c0_2 = arith.constant 0 : index
    %1 = vector.load %arg2[%c0_1, %c0_2] : memref<32x32xf32, #tpu.memory_space<vmem>>, vector<32x32xf32>
    %c0_3 = arith.constant 0 : index
    %c0_4 = arith.constant 0 : index
    %2 = vector.load %arg3[%c0_3, %c0_4] : memref<8x8xf32, #tpu.memory_space<vmem>>, vector<8x8xf32>
    %c0_5 = arith.constant 0 : index
    %c0_6 = arith.constant 0 : index
    %3 = vector.load %arg8[%c0_5, %c0_6] : memref<9x32xf32, #tpu.memory_space<vmem>>, vector<9x32xf32>
    %4 = vector.extract_strided_slice %3 {offsets = [0, 0], sizes = [1, 32], strides = [1, 1]} : vector<9x32xf32> to vector<1x32xf32>
    %5 = vector.extract_strided_slice %3 {offsets = [1, 0], sizes = [1, 32], strides = [1, 1]} : vector<9x32xf32> to vector<1x32xf32>
    %6 = vector.extract_strided_slice %3 {offsets = [2, 0], sizes = [1, 32], strides = [1, 1]} : vector<9x32xf32> to vector<1x32xf32>
    %7 = vector.extract_strided_slice %3 {offsets = [3, 0], sizes = [1, 32], strides = [1, 1]} : vector<9x32xf32> to vector<1x32xf32>
    %8 = vector.extract_strided_slice %3 {offsets = [4, 0], sizes = [1, 32], strides = [1, 1]} : vector<9x32xf32> to vector<1x32xf32>
    %9 = vector.extract_strided_slice %3 {offsets = [5, 0], sizes = [1, 32], strides = [1, 1]} : vector<9x32xf32> to vector<1x32xf32>
    %10 = vector.extract_strided_slice %3 {offsets = [6, 0], sizes = [1, 32], strides = [1, 1]} : vector<9x32xf32> to vector<1x32xf32>
    %11 = vector.extract_strided_slice %3 {offsets = [7, 0], sizes = [1, 32], strides = [1, 1]} : vector<9x32xf32> to vector<1x32xf32>
    %12 = vector.extract_strided_slice %3 {offsets = [8, 0], sizes = [1, 32], strides = [1, 1]} : vector<9x32xf32> to vector<1x32xf32>
    %c0_7 = arith.constant 0 : index
    %c0_8 = arith.constant 0 : index
    %13 = vector.load %arg9[%c0_7, %c0_8] : memref<1x64xf32, #tpu.memory_space<vmem>>, vector<1x64xf32>
    %c0_9 = arith.constant 0 : index
    %c0_10 = arith.constant 0 : index
    %14 = vector.load %arg4[%c0_9, %c0_10] : memref<32x128xf32, #tpu.memory_space<vmem>>, vector<32x128xf32>
    %15 = vector.extract_strided_slice %14 {offsets = [0, 0], sizes = [32, 96], strides = [1, 1]} : vector<32x128xf32> to vector<32x96xf32>
    %cst = arith.constant dense<0.000000e+00> : vector<16x96xf32>
    %16 = tpu.matmul %0, %15, %cst {dimension_numbers = #tpu.dot_dimension_numbers<[1], [0], [0], [1], [0, 0, 1, 1], [], []>} : vector<16x32xf32>, vector<32x96xf32>, vector<16x96xf32> -> vector<16x96xf32>
    %17 = vector.extract_strided_slice %16 {offsets = [0, 0], sizes = [16, 32], strides = [1, 1]} : vector<16x96xf32> to vector<16x32xf32>
    %18 = vector.extract_strided_slice %16 {offsets = [0, 32], sizes = [16, 32], strides = [1, 1]} : vector<16x96xf32> to vector<16x32xf32>
    %19 = vector.extract_strided_slice %16 {offsets = [0, 64], sizes = [16, 32], strides = [1, 1]} : vector<16x96xf32> to vector<16x32xf32>
    %20 = vector.extract_strided_slice %14 {offsets = [0, 96], sizes = [32, 32], strides = [1, 1]} : vector<32x128xf32> to vector<32x32xf32>
    %21 = vector.extract_strided_slice %17 {offsets = [0, 0], sizes = [8, 32], strides = [1, 1]} : vector<16x32xf32> to vector<8x32xf32>
    %22 = vector.extract_strided_slice %18 {offsets = [0, 0], sizes = [8, 32], strides = [1, 1]} : vector<16x32xf32> to vector<8x32xf32>
    %23 = vector.extract_strided_slice %19 {offsets = [0, 0], sizes = [8, 32], strides = [1, 1]} : vector<16x32xf32> to vector<8x32xf32>
    %24 = vector.extract_strided_slice %21 {offsets = [0, 0], sizes = [8, 8], strides = [1, 1]} : vector<8x32xf32> to vector<8x8xf32>
    %25 = vector.extract_strided_slice %22 {offsets = [0, 0], sizes = [8, 8], strides = [1, 1]} : vector<8x32xf32> to vector<8x8xf32>
    %cst_11 = arith.constant dense<0.000000e+00> : vector<8x8xf32>
    %26 = tpu.matmul %24, %25, %cst_11 {dimension_numbers = #tpu.dot_dimension_numbers<[1], [1], [0], [0], [0, 0, 1, 0], [], []>} : vector<8x8xf32>, vector<8x8xf32>, vector<8x8xf32> -> vector<8x8xf32>
    %cst_12 = arith.constant 0.176776692 : f32
    %27 = vector.broadcast %cst_12 : f32 to vector<8x8xf32>
    %28 = arith.mulf %26, %27 : vector<8x8xf32>
    %29 = arith.addf %28, %2 : vector<8x8xf32>
    %cst_13 = arith.constant dense<0xFF800000> : vector<8xf32>
    %30 = vector.multi_reduction <maximumf>, %29, %cst_13 [1] : vector<8x8xf32> to vector<8xf32>
    %31 = vector.shape_cast %30 : vector<8xf32> to vector<8x1xf32>
    %32 = vector.broadcast %31 : vector<8x1xf32> to vector<8x8xf32>
    %33 = arith.subf %29, %32 : vector<8x8xf32>
    %34 = math.exp %33 : vector<8x8xf32>
    %cst_14 = arith.constant dense<0.000000e+00> : vector<8xf32>
    %35 = vector.multi_reduction <add>, %34, %cst_14 [1] : vector<8x8xf32> to vector<8xf32>
    %36 = vector.shape_cast %35 : vector<8xf32> to vector<8x1xf32>
    %37 = tpu.reciprocal %36 : vector<8x1xf32> -> vector<8x1xf32>
    %38 = vector.broadcast %37 : vector<8x1xf32> to vector<8x8xf32>
    %39 = arith.mulf %34, %38 : vector<8x8xf32>
    %40 = vector.extract_strided_slice %23 {offsets = [0, 0], sizes = [8, 8], strides = [1, 1]} : vector<8x32xf32> to vector<8x8xf32>
    %cst_15 = arith.constant dense<0.000000e+00> : vector<8x8xf32>
    %41 = tpu.matmul %39, %40, %cst_15 {dimension_numbers = #tpu.dot_dimension_numbers<[1], [0], [0], [1], [0, 0, 1, 1], [], []>} : vector<8x8xf32>, vector<8x8xf32>, vector<8x8xf32> -> vector<8x8xf32>
    %42 = vector.extract_strided_slice %21 {offsets = [0, 8], sizes = [8, 8], strides = [1, 1]} : vector<8x32xf32> to vector<8x8xf32>
    %43 = vector.extract_strided_slice %22 {offsets = [0, 8], sizes = [8, 8], strides = [1, 1]} : vector<8x32xf32> to vector<8x8xf32>
    %cst_16 = arith.constant dense<0.000000e+00> : vector<8x8xf32>
    %44 = tpu.matmul %42, %43, %cst_16 {dimension_numbers = #tpu.dot_dimension_numbers<[1], [1], [0], [0], [0, 0, 1, 0], [], []>} : vector<8x8xf32>, vector<8x8xf32>, vector<8x8xf32> -> vector<8x8xf32>
    %cst_17 = arith.constant 0.176776692 : f32
    %45 = vector.broadcast %cst_17 : f32 to vector<8x8xf32>
    %46 = arith.mulf %44, %45 : vector<8x8xf32>
    %47 = arith.addf %46, %2 : vector<8x8xf32>
    %cst_18 = arith.constant dense<0xFF800000> : vector<8xf32>
    %48 = vector.multi_reduction <maximumf>, %47, %cst_18 [1] : vector<8x8xf32> to vector<8xf32>
    %49 = vector.shape_cast %48 : vector<8xf32> to vector<8x1xf32>
    %50 = vector.broadcast %49 : vector<8x1xf32> to vector<8x8xf32>
    %51 = arith.subf %47, %50 : vector<8x8xf32>
    %52 = math.exp %51 : vector<8x8xf32>
    %cst_19 = arith.constant dense<0.000000e+00> : vector<8xf32>
    %53 = vector.multi_reduction <add>, %52, %cst_19 [1] : vector<8x8xf32> to vector<8xf32>
    %54 = vector.shape_cast %53 : vector<8xf32> to vector<8x1xf32>
    %55 = tpu.reciprocal %54 : vector<8x1xf32> -> vector<8x1xf32>
    %56 = vector.broadcast %55 : vector<8x1xf32> to vector<8x8xf32>
    %57 = arith.mulf %52, %56 : vector<8x8xf32>
    %58 = vector.extract_strided_slice %23 {offsets = [0, 8], sizes = [8, 8], strides = [1, 1]} : vector<8x32xf32> to vector<8x8xf32>
    %cst_20 = arith.constant dense<0.000000e+00> : vector<8x8xf32>
    %59 = tpu.matmul %57, %58, %cst_20 {dimension_numbers = #tpu.dot_dimension_numbers<[1], [0], [0], [1], [0, 0, 1, 1], [], []>} : vector<8x8xf32>, vector<8x8xf32>, vector<8x8xf32> -> vector<8x8xf32>
    %60 = vector.extract_strided_slice %21 {offsets = [0, 16], sizes = [8, 8], strides = [1, 1]} : vector<8x32xf32> to vector<8x8xf32>
    %61 = vector.extract_strided_slice %22 {offsets = [0, 16], sizes = [8, 8], strides = [1, 1]} : vector<8x32xf32> to vector<8x8xf32>
    %cst_21 = arith.constant dense<0.000000e+00> : vector<8x8xf32>
    %62 = tpu.matmul %60, %61, %cst_21 {dimension_numbers = #tpu.dot_dimension_numbers<[1], [1], [0], [0], [0, 0, 1, 0], [], []>} : vector<8x8xf32>, vector<8x8xf32>, vector<8x8xf32> -> vector<8x8xf32>
    %cst_22 = arith.constant 0.176776692 : f32
    %63 = vector.broadcast %cst_22 : f32 to vector<8x8xf32>
    %64 = arith.mulf %62, %63 : vector<8x8xf32>
    %65 = arith.addf %64, %2 : vector<8x8xf32>
    %cst_23 = arith.constant dense<0xFF800000> : vector<8xf32>
    %66 = vector.multi_reduction <maximumf>, %65, %cst_23 [1] : vector<8x8xf32> to vector<8xf32>
    %67 = vector.shape_cast %66 : vector<8xf32> to vector<8x1xf32>
    %68 = vector.broadcast %67 : vector<8x1xf32> to vector<8x8xf32>
    %69 = arith.subf %65, %68 : vector<8x8xf32>
    %70 = math.exp %69 : vector<8x8xf32>
    %cst_24 = arith.constant dense<0.000000e+00> : vector<8xf32>
    %71 = vector.multi_reduction <add>, %70, %cst_24 [1] : vector<8x8xf32> to vector<8xf32>
    %72 = vector.shape_cast %71 : vector<8xf32> to vector<8x1xf32>
    %73 = tpu.reciprocal %72 : vector<8x1xf32> -> vector<8x1xf32>
    %74 = vector.broadcast %73 : vector<8x1xf32> to vector<8x8xf32>
    %75 = arith.mulf %70, %74 : vector<8x8xf32>
    %76 = vector.extract_strided_slice %23 {offsets = [0, 16], sizes = [8, 8], strides = [1, 1]} : vector<8x32xf32> to vector<8x8xf32>
    %cst_25 = arith.constant dense<0.000000e+00> : vector<8x8xf32>
    %77 = tpu.matmul %75, %76, %cst_25 {dimension_numbers = #tpu.dot_dimension_numbers<[1], [0], [0], [1], [0, 0, 1, 1], [], []>} : vector<8x8xf32>, vector<8x8xf32>, vector<8x8xf32> -> vector<8x8xf32>
    %78 = vector.extract_strided_slice %21 {offsets = [0, 24], sizes = [8, 8], strides = [1, 1]} : vector<8x32xf32> to vector<8x8xf32>
    %79 = vector.extract_strided_slice %22 {offsets = [0, 24], sizes = [8, 8], strides = [1, 1]} : vector<8x32xf32> to vector<8x8xf32>
    %cst_26 = arith.constant dense<0.000000e+00> : vector<8x8xf32>
    %80 = tpu.matmul %78, %79, %cst_26 {dimension_numbers = #tpu.dot_dimension_numbers<[1], [1], [0], [0], [0, 0, 1, 0], [], []>} : vector<8x8xf32>, vector<8x8xf32>, vector<8x8xf32> -> vector<8x8xf32>
    %cst_27 = arith.constant 0.176776692 : f32
    %81 = vector.broadcast %cst_27 : f32 to vector<8x8xf32>
    %82 = arith.mulf %80, %81 : vector<8x8xf32>
    %83 = arith.addf %82, %2 : vector<8x8xf32>
    %cst_28 = arith.constant dense<0xFF800000> : vector<8xf32>
    %84 = vector.multi_reduction <maximumf>, %83, %cst_28 [1] : vector<8x8xf32> to vector<8xf32>
    %85 = vector.shape_cast %84 : vector<8xf32> to vector<8x1xf32>
    %86 = vector.broadcast %85 : vector<8x1xf32> to vector<8x8xf32>
    %87 = arith.subf %83, %86 : vector<8x8xf32>
    %88 = math.exp %87 : vector<8x8xf32>
    %cst_29 = arith.constant dense<0.000000e+00> : vector<8xf32>
    %89 = vector.multi_reduction <add>, %88, %cst_29 [1] : vector<8x8xf32> to vector<8xf32>
    %90 = vector.shape_cast %89 : vector<8xf32> to vector<8x1xf32>
    %91 = tpu.reciprocal %90 : vector<8x1xf32> -> vector<8x1xf32>
    %92 = vector.broadcast %91 : vector<8x1xf32> to vector<8x8xf32>
    %93 = arith.mulf %88, %92 : vector<8x8xf32>
    %94 = vector.extract_strided_slice %23 {offsets = [0, 24], sizes = [8, 8], strides = [1, 1]} : vector<8x32xf32> to vector<8x8xf32>
    %cst_30 = arith.constant dense<0.000000e+00> : vector<8x8xf32>
    %95 = tpu.matmul %93, %94, %cst_30 {dimension_numbers = #tpu.dot_dimension_numbers<[1], [0], [0], [1], [0, 0, 1, 1], [], []>} : vector<8x8xf32>, vector<8x8xf32>, vector<8x8xf32> -> vector<8x8xf32>
    %96 = tpu.concatenate %41, %59, %77, %95 in 1 : vector<8x8xf32>, vector<8x8xf32>, vector<8x8xf32>, vector<8x8xf32> -> vector<8x32xf32>
    %cst_31 = arith.constant dense<0.000000e+00> : vector<8x32xf32>
    %97 = tpu.matmul %96, %20, %cst_31 {dimension_numbers = #tpu.dot_dimension_numbers<[1], [0], [0], [1], [0, 0, 1, 1], [], []>} : vector<8x32xf32>, vector<32x32xf32>, vector<8x32xf32> -> vector<8x32xf32>
    %98 = tpu.concatenate %39, %57, %75, %93 in 1 : vector<8x8xf32>, vector<8x8xf32>, vector<8x8xf32>, vector<8x8xf32> -> vector<8x32xf32>
    %99 = vector.extract_strided_slice %17 {offsets = [8, 0], sizes = [8, 32], strides = [1, 1]} : vector<16x32xf32> to vector<8x32xf32>
    %100 = vector.extract_strided_slice %18 {offsets = [8, 0], sizes = [8, 32], strides = [1, 1]} : vector<16x32xf32> to vector<8x32xf32>
    %101 = vector.extract_strided_slice %19 {offsets = [8, 0], sizes = [8, 32], strides = [1, 1]} : vector<16x32xf32> to vector<8x32xf32>
    %102 = vector.extract_strided_slice %99 {offsets = [0, 0], sizes = [8, 8], strides = [1, 1]} : vector<8x32xf32> to vector<8x8xf32>
    %103 = vector.extract_strided_slice %100 {offsets = [0, 0], sizes = [8, 8], strides = [1, 1]} : vector<8x32xf32> to vector<8x8xf32>
    %cst_32 = arith.constant dense<0.000000e+00> : vector<8x8xf32>
    %104 = tpu.matmul %102, %103, %cst_32 {dimension_numbers = #tpu.dot_dimension_numbers<[1], [1], [0], [0], [0, 0, 1, 0], [], []>} : vector<8x8xf32>, vector<8x8xf32>, vector<8x8xf32> -> vector<8x8xf32>
    %cst_33 = arith.constant 0.176776692 : f32
    %105 = vector.broadcast %cst_33 : f32 to vector<8x8xf32>
    %106 = arith.mulf %104, %105 : vector<8x8xf32>
    %107 = arith.addf %106, %2 : vector<8x8xf32>
    %cst_34 = arith.constant dense<0xFF800000> : vector<8xf32>
    %108 = vector.multi_reduction <maximumf>, %107, %cst_34 [1] : vector<8x8xf32> to vector<8xf32>
    %109 = vector.shape_cast %108 : vector<8xf32> to vector<8x1xf32>
    %110 = vector.broadcast %109 : vector<8x1xf32> to vector<8x8xf32>
    %111 = arith.subf %107, %110 : vector<8x8xf32>
    %112 = math.exp %111 : vector<8x8xf32>
    %cst_35 = arith.constant dense<0.000000e+00> : vector<8xf32>
    %113 = vector.multi_reduction <add>, %112, %cst_35 [1] : vector<8x8xf32> to vector<8xf32>
    %114 = vector.shape_cast %113 : vector<8xf32> to vector<8x1xf32>
    %115 = tpu.reciprocal %114 : vector<8x1xf32> -> vector<8x1xf32>
    %116 = vector.broadcast %115 : vector<8x1xf32> to vector<8x8xf32>
    %117 = arith.mulf %112, %116 : vector<8x8xf32>
    %118 = vector.extract_strided_slice %101 {offsets = [0, 0], sizes = [8, 8], strides = [1, 1]} : vector<8x32xf32> to vector<8x8xf32>
    %cst_36 = arith.constant dense<0.000000e+00> : vector<8x8xf32>
    %119 = tpu.matmul %117, %118, %cst_36 {dimension_numbers = #tpu.dot_dimension_numbers<[1], [0], [0], [1], [0, 0, 1, 1], [], []>} : vector<8x8xf32>, vector<8x8xf32>, vector<8x8xf32> -> vector<8x8xf32>
    %120 = vector.extract_strided_slice %99 {offsets = [0, 8], sizes = [8, 8], strides = [1, 1]} : vector<8x32xf32> to vector<8x8xf32>
    %121 = vector.extract_strided_slice %100 {offsets = [0, 8], sizes = [8, 8], strides = [1, 1]} : vector<8x32xf32> to vector<8x8xf32>
    %cst_37 = arith.constant dense<0.000000e+00> : vector<8x8xf32>
    %122 = tpu.matmul %120, %121, %cst_37 {dimension_numbers = #tpu.dot_dimension_numbers<[1], [1], [0], [0], [0, 0, 1, 0], [], []>} : vector<8x8xf32>, vector<8x8xf32>, vector<8x8xf32> -> vector<8x8xf32>
    %cst_38 = arith.constant 0.176776692 : f32
    %123 = vector.broadcast %cst_38 : f32 to vector<8x8xf32>
    %124 = arith.mulf %122, %123 : vector<8x8xf32>
    %125 = arith.addf %124, %2 : vector<8x8xf32>
    %cst_39 = arith.constant dense<0xFF800000> : vector<8xf32>
    %126 = vector.multi_reduction <maximumf>, %125, %cst_39 [1] : vector<8x8xf32> to vector<8xf32>
    %127 = vector.shape_cast %126 : vector<8xf32> to vector<8x1xf32>
    %128 = vector.broadcast %127 : vector<8x1xf32> to vector<8x8xf32>
    %129 = arith.subf %125, %128 : vector<8x8xf32>
    %130 = math.exp %129 : vector<8x8xf32>
    %cst_40 = arith.constant dense<0.000000e+00> : vector<8xf32>
    %131 = vector.multi_reduction <add>, %130, %cst_40 [1] : vector<8x8xf32> to vector<8xf32>
    %132 = vector.shape_cast %131 : vector<8xf32> to vector<8x1xf32>
    %133 = tpu.reciprocal %132 : vector<8x1xf32> -> vector<8x1xf32>
    %134 = vector.broadcast %133 : vector<8x1xf32> to vector<8x8xf32>
    %135 = arith.mulf %130, %134 : vector<8x8xf32>
    %136 = vector.extract_strided_slice %101 {offsets = [0, 8], sizes = [8, 8], strides = [1, 1]} : vector<8x32xf32> to vector<8x8xf32>
    %cst_41 = arith.constant dense<0.000000e+00> : vector<8x8xf32>
    %137 = tpu.matmul %135, %136, %cst_41 {dimension_numbers = #tpu.dot_dimension_numbers<[1], [0], [0], [1], [0, 0, 1, 1], [], []>} : vector<8x8xf32>, vector<8x8xf32>, vector<8x8xf32> -> vector<8x8xf32>
    %138 = vector.extract_strided_slice %99 {offsets = [0, 16], sizes = [8, 8], strides = [1, 1]} : vector<8x32xf32> to vector<8x8xf32>
    %139 = vector.extract_strided_slice %100 {offsets = [0, 16], sizes = [8, 8], strides = [1, 1]} : vector<8x32xf32> to vector<8x8xf32>
    %cst_42 = arith.constant dense<0.000000e+00> : vector<8x8xf32>
    %140 = tpu.matmul %138, %139, %cst_42 {dimension_numbers = #tpu.dot_dimension_numbers<[1], [1], [0], [0], [0, 0, 1, 0], [], []>} : vector<8x8xf32>, vector<8x8xf32>, vector<8x8xf32> -> vector<8x8xf32>
    %cst_43 = arith.constant 0.176776692 : f32
    %141 = vector.broadcast %cst_43 : f32 to vector<8x8xf32>
    %142 = arith.mulf %140, %141 : vector<8x8xf32>
    %143 = arith.addf %142, %2 : vector<8x8xf32>
    %cst_44 = arith.constant dense<0xFF800000> : vector<8xf32>
    %144 = vector.multi_reduction <maximumf>, %143, %cst_44 [1] : vector<8x8xf32> to vector<8xf32>
    %145 = vector.shape_cast %144 : vector<8xf32> to vector<8x1xf32>
    %146 = vector.broadcast %145 : vector<8x1xf32> to vector<8x8xf32>
    %147 = arith.subf %143, %146 : vector<8x8xf32>
    %148 = math.exp %147 : vector<8x8xf32>
    %cst_45 = arith.constant dense<0.000000e+00> : vector<8xf32>
    %149 = vector.multi_reduction <add>, %148, %cst_45 [1] : vector<8x8xf32> to vector<8xf32>
    %150 = vector.shape_cast %149 : vector<8xf32> to vector<8x1xf32>
    %151 = tpu.reciprocal %150 : vector<8x1xf32> -> vector<8x1xf32>
    %152 = vector.broadcast %151 : vector<8x1xf32> to vector<8x8xf32>
    %153 = arith.mulf %148, %152 : vector<8x8xf32>
    %154 = vector.extract_strided_slice %101 {offsets = [0, 16], sizes = [8, 8], strides = [1, 1]} : vector<8x32xf32> to vector<8x8xf32>
    %cst_46 = arith.constant dense<0.000000e+00> : vector<8x8xf32>
    %155 = tpu.matmul %153, %154, %cst_46 {dimension_numbers = #tpu.dot_dimension_numbers<[1], [0], [0], [1], [0, 0, 1, 1], [], []>} : vector<8x8xf32>, vector<8x8xf32>, vector<8x8xf32> -> vector<8x8xf32>
    %156 = vector.extract_strided_slice %99 {offsets = [0, 24], sizes = [8, 8], strides = [1, 1]} : vector<8x32xf32> to vector<8x8xf32>
    %157 = vector.extract_strided_slice %100 {offsets = [0, 24], sizes = [8, 8], strides = [1, 1]} : vector<8x32xf32> to vector<8x8xf32>
    %cst_47 = arith.constant dense<0.000000e+00> : vector<8x8xf32>
    %158 = tpu.matmul %156, %157, %cst_47 {dimension_numbers = #tpu.dot_dimension_numbers<[1], [1], [0], [0], [0, 0, 1, 0], [], []>} : vector<8x8xf32>, vector<8x8xf32>, vector<8x8xf32> -> vector<8x8xf32>
    %cst_48 = arith.constant 0.176776692 : f32
    %159 = vector.broadcast %cst_48 : f32 to vector<8x8xf32>
    %160 = arith.mulf %158, %159 : vector<8x8xf32>
    %161 = arith.addf %160, %2 : vector<8x8xf32>
    %cst_49 = arith.constant dense<0xFF800000> : vector<8xf32>
    %162 = vector.multi_reduction <maximumf>, %161, %cst_49 [1] : vector<8x8xf32> to vector<8xf32>
    %163 = vector.shape_cast %162 : vector<8xf32> to vector<8x1xf32>
    %164 = vector.broadcast %163 : vector<8x1xf32> to vector<8x8xf32>
    %165 = arith.subf %161, %164 : vector<8x8xf32>
    %166 = math.exp %165 : vector<8x8xf32>
    %cst_50 = arith.constant dense<0.000000e+00> : vector<8xf32>
    %167 = vector.multi_reduction <add>, %166, %cst_50 [1] : vector<8x8xf32> to vector<8xf32>
    %168 = vector.shape_cast %167 : vector<8xf32> to vector<8x1xf32>
    %169 = tpu.reciprocal %168 : vector<8x1xf32> -> vector<8x1xf32>
    %170 = vector.broadcast %169 : vector<8x1xf32> to vector<8x8xf32>
    %171 = arith.mulf %166, %170 : vector<8x8xf32>
    %172 = vector.extract_strided_slice %101 {offsets = [0, 24], sizes = [8, 8], strides = [1, 1]} : vector<8x32xf32> to vector<8x8xf32>
    %cst_51 = arith.constant dense<0.000000e+00> : vector<8x8xf32>
    %173 = tpu.matmul %171, %172, %cst_51 {dimension_numbers = #tpu.dot_dimension_numbers<[1], [0], [0], [1], [0, 0, 1, 1], [], []>} : vector<8x8xf32>, vector<8x8xf32>, vector<8x8xf32> -> vector<8x8xf32>
    %174 = tpu.concatenate %119, %137, %155, %173 in 1 : vector<8x8xf32>, vector<8x8xf32>, vector<8x8xf32>, vector<8x8xf32> -> vector<8x32xf32>
    %cst_52 = arith.constant dense<0.000000e+00> : vector<8x32xf32>
    %175 = tpu.matmul %174, %20, %cst_52 {dimension_numbers = #tpu.dot_dimension_numbers<[1], [0], [0], [1], [0, 0, 1, 1], [], []>} : vector<8x32xf32>, vector<32x32xf32>, vector<8x32xf32> -> vector<8x32xf32>
    %176 = tpu.concatenate %117, %135, %153, %171 in 1 : vector<8x8xf32>, vector<8x8xf32>, vector<8x8xf32>, vector<8x8xf32> -> vector<8x32xf32>
    %177 = tpu.concatenate %97, %175 in 0 : vector<8x32xf32>, vector<8x32xf32> -> vector<16x32xf32>
    %178 = tpu.concatenate %98, %176 in 0 : vector<8x32xf32>, vector<8x32xf32> -> vector<16x32xf32>
    %179 = arith.addf %0, %177 : vector<16x32xf32>
    %180 = vector.broadcast %4 : vector<1x32xf32> to vector<16x32xf32>
    %181 = arith.addf %179, %180 : vector<16x32xf32>
    %cst_53 = arith.constant dense<0.000000e+00> : vector<16xf32>
    %182 = vector.multi_reduction <add>, %181, %cst_53 [1] : vector<16x32xf32> to vector<16xf32>
    %183 = vector.shape_cast %182 : vector<16xf32> to vector<16x1xf32>
    %cst_54 = arith.constant 3.200000e+01 : f32
    %184 = vector.broadcast %cst_54 : f32 to vector<16x1xf32>
    %185 = arith.divf %183, %184 : vector<16x1xf32>
    %186 = vector.broadcast %185 : vector<16x1xf32> to vector<16x32xf32>
    %187 = arith.subf %181, %186 : vector<16x32xf32>
    %188 = arith.mulf %187, %187 : vector<16x32xf32>
    %cst_55 = arith.constant dense<0.000000e+00> : vector<16xf32>
    %189 = vector.multi_reduction <add>, %188, %cst_55 [1] : vector<16x32xf32> to vector<16xf32>
    %190 = vector.shape_cast %189 : vector<16xf32> to vector<16x1xf32>
    %cst_56 = arith.constant 3.200000e+01 : f32
    %191 = vector.broadcast %cst_56 : f32 to vector<16x1xf32>
    %192 = arith.divf %190, %191 : vector<16x1xf32>
    %193 = vector.broadcast %185 : vector<16x1xf32> to vector<16x32xf32>
    %194 = arith.subf %181, %193 : vector<16x32xf32>
    %cst_57 = arith.constant 9.99999974E-6 : f32
    %195 = vector.broadcast %cst_57 : f32 to vector<16x1xf32>
    %196 = arith.addf %192, %195 : vector<16x1xf32>
    %197 = math.rsqrt %196 : vector<16x1xf32>
    %198 = vector.broadcast %197 : vector<16x1xf32> to vector<16x32xf32>
    %199 = arith.mulf %194, %198 : vector<16x32xf32>
    %200 = vector.broadcast %7 : vector<1x32xf32> to vector<16x32xf32>
    %201 = arith.mulf %199, %200 : vector<16x32xf32>
    %202 = vector.broadcast %8 : vector<1x32xf32> to vector<16x32xf32>
    %203 = arith.addf %201, %202 : vector<16x32xf32>
    %c0_58 = arith.constant 0 : index
    %c0_59 = arith.constant 0 : index
    %204 = vector.load %arg5[%c0_58, %c0_59] : memref<32x128xf32, #tpu.memory_space<vmem>>, vector<32x128xf32>
    %205 = vector.extract_strided_slice %204 {offsets = [0, 0], sizes = [32, 32], strides = [1, 1]} : vector<32x128xf32> to vector<32x32xf32>
    %cst_60 = arith.constant dense<0.000000e+00> : vector<16x32xf32>
    %206 = tpu.matmul %203, %205, %cst_60 {dimension_numbers = #tpu.dot_dimension_numbers<[1], [0], [0], [1], [0, 0, 1, 1], [], []>} : vector<16x32xf32>, vector<32x32xf32>, vector<16x32xf32> -> vector<16x32xf32>
    %207 = vector.extract_strided_slice %204 {offsets = [0, 32], sizes = [32, 64], strides = [1, 1]} : vector<32x128xf32> to vector<32x64xf32>
    %cst_61 = arith.constant dense<0.000000e+00> : vector<32x64xf32>
    %208 = tpu.matmul %1, %207, %cst_61 {dimension_numbers = #tpu.dot_dimension_numbers<[1], [0], [0], [1], [0, 0, 1, 1], [], []>} : vector<32x32xf32>, vector<32x64xf32>, vector<32x64xf32> -> vector<32x64xf32>
    %209 = vector.extract_strided_slice %208 {offsets = [0, 0], sizes = [32, 32], strides = [1, 1]} : vector<32x64xf32> to vector<32x32xf32>
    %210 = vector.extract_strided_slice %208 {offsets = [0, 32], sizes = [32, 32], strides = [1, 1]} : vector<32x64xf32> to vector<32x32xf32>
    %211 = vector.extract_strided_slice %204 {offsets = [0, 96], sizes = [32, 32], strides = [1, 1]} : vector<32x128xf32> to vector<32x32xf32>
    %212 = vector.extract_strided_slice %206 {offsets = [0, 0], sizes = [8, 32], strides = [1, 1]} : vector<16x32xf32> to vector<8x32xf32>
    %213 = vector.extract_strided_slice %209 {offsets = [0, 0], sizes = [16, 32], strides = [1, 1]} : vector<32x32xf32> to vector<16x32xf32>
    %214 = vector.extract_strided_slice %210 {offsets = [0, 0], sizes = [16, 32], strides = [1, 1]} : vector<32x32xf32> to vector<16x32xf32>
    %215 = vector.extract_strided_slice %212 {offsets = [0, 0], sizes = [8, 8], strides = [1, 1]} : vector<8x32xf32> to vector<8x8xf32>
    %216 = vector.extract_strided_slice %213 {offsets = [0, 0], sizes = [16, 8], strides = [1, 1]} : vector<16x32xf32> to vector<16x8xf32>
    %cst_62 = arith.constant dense<0.000000e+00> : vector<8x16xf32>
    %217 = tpu.matmul %215, %216, %cst_62 {dimension_numbers = #tpu.dot_dimension_numbers<[1], [1], [0], [0], [0, 0, 1, 0], [], []>} : vector<8x8xf32>, vector<16x8xf32>, vector<8x16xf32> -> vector<8x16xf32>
    %cst_63 = arith.constant 0.176776692 : f32
    %218 = vector.broadcast %cst_63 : f32 to vector<8x16xf32>
    %219 = arith.mulf %217, %218 : vector<8x16xf32>
    %cst_64 = arith.constant dense<0xFF800000> : vector<8xf32>
    %220 = vector.multi_reduction <maximumf>, %219, %cst_64 [1] : vector<8x16xf32> to vector<8xf32>
    %221 = vector.shape_cast %220 : vector<8xf32> to vector<8x1xf32>
    %222 = vector.broadcast %221 : vector<8x1xf32> to vector<8x16xf32>
    %223 = arith.subf %219, %222 : vector<8x16xf32>
    %224 = math.exp %223 : vector<8x16xf32>
    %cst_65 = arith.constant dense<0.000000e+00> : vector<8xf32>
    %225 = vector.multi_reduction <add>, %224, %cst_65 [1] : vector<8x16xf32> to vector<8xf32>
    %226 = vector.shape_cast %225 : vector<8xf32> to vector<8x1xf32>
    %227 = tpu.reciprocal %226 : vector<8x1xf32> -> vector<8x1xf32>
    %228 = vector.broadcast %227 : vector<8x1xf32> to vector<8x16xf32>
    %229 = arith.mulf %224, %228 : vector<8x16xf32>
    %230 = vector.extract_strided_slice %214 {offsets = [0, 0], sizes = [16, 8], strides = [1, 1]} : vector<16x32xf32> to vector<16x8xf32>
    %cst_66 = arith.constant dense<0.000000e+00> : vector<8x8xf32>
    %231 = tpu.matmul %229, %230, %cst_66 {dimension_numbers = #tpu.dot_dimension_numbers<[1], [0], [0], [1], [0, 0, 1, 1], [], []>} : vector<8x16xf32>, vector<16x8xf32>, vector<8x8xf32> -> vector<8x8xf32>
    %232 = vector.extract_strided_slice %212 {offsets = [0, 8], sizes = [8, 8], strides = [1, 1]} : vector<8x32xf32> to vector<8x8xf32>
    %233 = vector.extract_strided_slice %213 {offsets = [0, 8], sizes = [16, 8], strides = [1, 1]} : vector<16x32xf32> to vector<16x8xf32>
    %cst_67 = arith.constant dense<0.000000e+00> : vector<8x16xf32>
    %234 = tpu.matmul %232, %233, %cst_67 {dimension_numbers = #tpu.dot_dimension_numbers<[1], [1], [0], [0], [0, 0, 1, 0], [], []>} : vector<8x8xf32>, vector<16x8xf32>, vector<8x16xf32> -> vector<8x16xf32>
    %cst_68 = arith.constant 0.176776692 : f32
    %235 = vector.broadcast %cst_68 : f32 to vector<8x16xf32>
    %236 = arith.mulf %234, %235 : vector<8x16xf32>
    %cst_69 = arith.constant dense<0xFF800000> : vector<8xf32>
    %237 = vector.multi_reduction <maximumf>, %236, %cst_69 [1] : vector<8x16xf32> to vector<8xf32>
    %238 = vector.shape_cast %237 : vector<8xf32> to vector<8x1xf32>
    %239 = vector.broadcast %238 : vector<8x1xf32> to vector<8x16xf32>
    %240 = arith.subf %236, %239 : vector<8x16xf32>
    %241 = math.exp %240 : vector<8x16xf32>
    %cst_70 = arith.constant dense<0.000000e+00> : vector<8xf32>
    %242 = vector.multi_reduction <add>, %241, %cst_70 [1] : vector<8x16xf32> to vector<8xf32>
    %243 = vector.shape_cast %242 : vector<8xf32> to vector<8x1xf32>
    %244 = tpu.reciprocal %243 : vector<8x1xf32> -> vector<8x1xf32>
    %245 = vector.broadcast %244 : vector<8x1xf32> to vector<8x16xf32>
    %246 = arith.mulf %241, %245 : vector<8x16xf32>
    %247 = vector.extract_strided_slice %214 {offsets = [0, 8], sizes = [16, 8], strides = [1, 1]} : vector<16x32xf32> to vector<16x8xf32>
    %cst_71 = arith.constant dense<0.000000e+00> : vector<8x8xf32>
    %248 = tpu.matmul %246, %247, %cst_71 {dimension_numbers = #tpu.dot_dimension_numbers<[1], [0], [0], [1], [0, 0, 1, 1], [], []>} : vector<8x16xf32>, vector<16x8xf32>, vector<8x8xf32> -> vector<8x8xf32>
    %249 = vector.extract_strided_slice %212 {offsets = [0, 16], sizes = [8, 8], strides = [1, 1]} : vector<8x32xf32> to vector<8x8xf32>
    %250 = vector.extract_strided_slice %213 {offsets = [0, 16], sizes = [16, 8], strides = [1, 1]} : vector<16x32xf32> to vector<16x8xf32>
    %cst_72 = arith.constant dense<0.000000e+00> : vector<8x16xf32>
    %251 = tpu.matmul %249, %250, %cst_72 {dimension_numbers = #tpu.dot_dimension_numbers<[1], [1], [0], [0], [0, 0, 1, 0], [], []>} : vector<8x8xf32>, vector<16x8xf32>, vector<8x16xf32> -> vector<8x16xf32>
    %cst_73 = arith.constant 0.176776692 : f32
    %252 = vector.broadcast %cst_73 : f32 to vector<8x16xf32>
    %253 = arith.mulf %251, %252 : vector<8x16xf32>
    %cst_74 = arith.constant dense<0xFF800000> : vector<8xf32>
    %254 = vector.multi_reduction <maximumf>, %253, %cst_74 [1] : vector<8x16xf32> to vector<8xf32>
    %255 = vector.shape_cast %254 : vector<8xf32> to vector<8x1xf32>
    %256 = vector.broadcast %255 : vector<8x1xf32> to vector<8x16xf32>
    %257 = arith.subf %253, %256 : vector<8x16xf32>
    %258 = math.exp %257 : vector<8x16xf32>
    %cst_75 = arith.constant dense<0.000000e+00> : vector<8xf32>
    %259 = vector.multi_reduction <add>, %258, %cst_75 [1] : vector<8x16xf32> to vector<8xf32>
    %260 = vector.shape_cast %259 : vector<8xf32> to vector<8x1xf32>
    %261 = tpu.reciprocal %260 : vector<8x1xf32> -> vector<8x1xf32>
    %262 = vector.broadcast %261 : vector<8x1xf32> to vector<8x16xf32>
    %263 = arith.mulf %258, %262 : vector<8x16xf32>
    %264 = vector.extract_strided_slice %214 {offsets = [0, 16], sizes = [16, 8], strides = [1, 1]} : vector<16x32xf32> to vector<16x8xf32>
    %cst_76 = arith.constant dense<0.000000e+00> : vector<8x8xf32>
    %265 = tpu.matmul %263, %264, %cst_76 {dimension_numbers = #tpu.dot_dimension_numbers<[1], [0], [0], [1], [0, 0, 1, 1], [], []>} : vector<8x16xf32>, vector<16x8xf32>, vector<8x8xf32> -> vector<8x8xf32>
    %266 = vector.extract_strided_slice %212 {offsets = [0, 24], sizes = [8, 8], strides = [1, 1]} : vector<8x32xf32> to vector<8x8xf32>
    %267 = vector.extract_strided_slice %213 {offsets = [0, 24], sizes = [16, 8], strides = [1, 1]} : vector<16x32xf32> to vector<16x8xf32>
    %cst_77 = arith.constant dense<0.000000e+00> : vector<8x16xf32>
    %268 = tpu.matmul %266, %267, %cst_77 {dimension_numbers = #tpu.dot_dimension_numbers<[1], [1], [0], [0], [0, 0, 1, 0], [], []>} : vector<8x8xf32>, vector<16x8xf32>, vector<8x16xf32> -> vector<8x16xf32>
    %cst_78 = arith.constant 0.176776692 : f32
    %269 = vector.broadcast %cst_78 : f32 to vector<8x16xf32>
    %270 = arith.mulf %268, %269 : vector<8x16xf32>
    %cst_79 = arith.constant dense<0xFF800000> : vector<8xf32>
    %271 = vector.multi_reduction <maximumf>, %270, %cst_79 [1] : vector<8x16xf32> to vector<8xf32>
    %272 = vector.shape_cast %271 : vector<8xf32> to vector<8x1xf32>
    %273 = vector.broadcast %272 : vector<8x1xf32> to vector<8x16xf32>
    %274 = arith.subf %270, %273 : vector<8x16xf32>
    %275 = math.exp %274 : vector<8x16xf32>
    %cst_80 = arith.constant dense<0.000000e+00> : vector<8xf32>
    %276 = vector.multi_reduction <add>, %275, %cst_80 [1] : vector<8x16xf32> to vector<8xf32>
    %277 = vector.shape_cast %276 : vector<8xf32> to vector<8x1xf32>
    %278 = tpu.reciprocal %277 : vector<8x1xf32> -> vector<8x1xf32>
    %279 = vector.broadcast %278 : vector<8x1xf32> to vector<8x16xf32>
    %280 = arith.mulf %275, %279 : vector<8x16xf32>
    %281 = vector.extract_strided_slice %214 {offsets = [0, 24], sizes = [16, 8], strides = [1, 1]} : vector<16x32xf32> to vector<16x8xf32>
    %cst_81 = arith.constant dense<0.000000e+00> : vector<8x8xf32>
    %282 = tpu.matmul %280, %281, %cst_81 {dimension_numbers = #tpu.dot_dimension_numbers<[1], [0], [0], [1], [0, 0, 1, 1], [], []>} : vector<8x16xf32>, vector<16x8xf32>, vector<8x8xf32> -> vector<8x8xf32>
    %283 = tpu.concatenate %231, %248, %265, %282 in 1 : vector<8x8xf32>, vector<8x8xf32>, vector<8x8xf32>, vector<8x8xf32> -> vector<8x32xf32>
    %cst_82 = arith.constant dense<0.000000e+00> : vector<8x32xf32>
    %284 = tpu.matmul %283, %211, %cst_82 {dimension_numbers = #tpu.dot_dimension_numbers<[1], [0], [0], [1], [0, 0, 1, 1], [], []>} : vector<8x32xf32>, vector<32x32xf32>, vector<8x32xf32> -> vector<8x32xf32>
    %285 = tpu.concatenate %229, %246, %263, %280 in 1 : vector<8x16xf32>, vector<8x16xf32>, vector<8x16xf32>, vector<8x16xf32> -> vector<8x64xf32>
    %286 = vector.extract_strided_slice %206 {offsets = [8, 0], sizes = [8, 32], strides = [1, 1]} : vector<16x32xf32> to vector<8x32xf32>
    %287 = vector.extract_strided_slice %209 {offsets = [16, 0], sizes = [16, 32], strides = [1, 1]} : vector<32x32xf32> to vector<16x32xf32>
    %288 = vector.extract_strided_slice %210 {offsets = [16, 0], sizes = [16, 32], strides = [1, 1]} : vector<32x32xf32> to vector<16x32xf32>
    %289 = vector.extract_strided_slice %286 {offsets = [0, 0], sizes = [8, 8], strides = [1, 1]} : vector<8x32xf32> to vector<8x8xf32>
    %290 = vector.extract_strided_slice %287 {offsets = [0, 0], sizes = [16, 8], strides = [1, 1]} : vector<16x32xf32> to vector<16x8xf32>
    %cst_83 = arith.constant dense<0.000000e+00> : vector<8x16xf32>
    %291 = tpu.matmul %289, %290, %cst_83 {dimension_numbers = #tpu.dot_dimension_numbers<[1], [1], [0], [0], [0, 0, 1, 0], [], []>} : vector<8x8xf32>, vector<16x8xf32>, vector<8x16xf32> -> vector<8x16xf32>
    %cst_84 = arith.constant 0.176776692 : f32
    %292 = vector.broadcast %cst_84 : f32 to vector<8x16xf32>
    %293 = arith.mulf %291, %292 : vector<8x16xf32>
    %cst_85 = arith.constant dense<0xFF800000> : vector<8xf32>
    %294 = vector.multi_reduction <maximumf>, %293, %cst_85 [1] : vector<8x16xf32> to vector<8xf32>
    %295 = vector.shape_cast %294 : vector<8xf32> to vector<8x1xf32>
    %296 = vector.broadcast %295 : vector<8x1xf32> to vector<8x16xf32>
    %297 = arith.subf %293, %296 : vector<8x16xf32>
    %298 = math.exp %297 : vector<8x16xf32>
    %cst_86 = arith.constant dense<0.000000e+00> : vector<8xf32>
    %299 = vector.multi_reduction <add>, %298, %cst_86 [1] : vector<8x16xf32> to vector<8xf32>
    %300 = vector.shape_cast %299 : vector<8xf32> to vector<8x1xf32>
    %301 = tpu.reciprocal %300 : vector<8x1xf32> -> vector<8x1xf32>
    %302 = vector.broadcast %301 : vector<8x1xf32> to vector<8x16xf32>
    %303 = arith.mulf %298, %302 : vector<8x16xf32>
    %304 = vector.extract_strided_slice %288 {offsets = [0, 0], sizes = [16, 8], strides = [1, 1]} : vector<16x32xf32> to vector<16x8xf32>
    %cst_87 = arith.constant dense<0.000000e+00> : vector<8x8xf32>
    %305 = tpu.matmul %303, %304, %cst_87 {dimension_numbers = #tpu.dot_dimension_numbers<[1], [0], [0], [1], [0, 0, 1, 1], [], []>} : vector<8x16xf32>, vector<16x8xf32>, vector<8x8xf32> -> vector<8x8xf32>
    %306 = vector.extract_strided_slice %286 {offsets = [0, 8], sizes = [8, 8], strides = [1, 1]} : vector<8x32xf32> to vector<8x8xf32>
    %307 = vector.extract_strided_slice %287 {offsets = [0, 8], sizes = [16, 8], strides = [1, 1]} : vector<16x32xf32> to vector<16x8xf32>
    %cst_88 = arith.constant dense<0.000000e+00> : vector<8x16xf32>
    %308 = tpu.matmul %306, %307, %cst_88 {dimension_numbers = #tpu.dot_dimension_numbers<[1], [1], [0], [0], [0, 0, 1, 0], [], []>} : vector<8x8xf32>, vector<16x8xf32>, vector<8x16xf32> -> vector<8x16xf32>
    %cst_89 = arith.constant 0.176776692 : f32
    %309 = vector.broadcast %cst_89 : f32 to vector<8x16xf32>
    %310 = arith.mulf %308, %309 : vector<8x16xf32>
    %cst_90 = arith.constant dense<0xFF800000> : vector<8xf32>
    %311 = vector.multi_reduction <maximumf>, %310, %cst_90 [1] : vector<8x16xf32> to vector<8xf32>
    %312 = vector.shape_cast %311 : vector<8xf32> to vector<8x1xf32>
    %313 = vector.broadcast %312 : vector<8x1xf32> to vector<8x16xf32>
    %314 = arith.subf %310, %313 : vector<8x16xf32>
    %315 = math.exp %314 : vector<8x16xf32>
    %cst_91 = arith.constant dense<0.000000e+00> : vector<8xf32>
    %316 = vector.multi_reduction <add>, %315, %cst_91 [1] : vector<8x16xf32> to vector<8xf32>
    %317 = vector.shape_cast %316 : vector<8xf32> to vector<8x1xf32>
    %318 = tpu.reciprocal %317 : vector<8x1xf32> -> vector<8x1xf32>
    %319 = vector.broadcast %318 : vector<8x1xf32> to vector<8x16xf32>
    %320 = arith.mulf %315, %319 : vector<8x16xf32>
    %321 = vector.extract_strided_slice %288 {offsets = [0, 8], sizes = [16, 8], strides = [1, 1]} : vector<16x32xf32> to vector<16x8xf32>
    %cst_92 = arith.constant dense<0.000000e+00> : vector<8x8xf32>
    %322 = tpu.matmul %320, %321, %cst_92 {dimension_numbers = #tpu.dot_dimension_numbers<[1], [0], [0], [1], [0, 0, 1, 1], [], []>} : vector<8x16xf32>, vector<16x8xf32>, vector<8x8xf32> -> vector<8x8xf32>
    %323 = vector.extract_strided_slice %286 {offsets = [0, 16], sizes = [8, 8], strides = [1, 1]} : vector<8x32xf32> to vector<8x8xf32>
    %324 = vector.extract_strided_slice %287 {offsets = [0, 16], sizes = [16, 8], strides = [1, 1]} : vector<16x32xf32> to vector<16x8xf32>
    %cst_93 = arith.constant dense<0.000000e+00> : vector<8x16xf32>
    %325 = tpu.matmul %323, %324, %cst_93 {dimension_numbers = #tpu.dot_dimension_numbers<[1], [1], [0], [0], [0, 0, 1, 0], [], []>} : vector<8x8xf32>, vector<16x8xf32>, vector<8x16xf32> -> vector<8x16xf32>
    %cst_94 = arith.constant 0.176776692 : f32
    %326 = vector.broadcast %cst_94 : f32 to vector<8x16xf32>
    %327 = arith.mulf %325, %326 : vector<8x16xf32>
    %cst_95 = arith.constant dense<0xFF800000> : vector<8xf32>
    %328 = vector.multi_reduction <maximumf>, %327, %cst_95 [1] : vector<8x16xf32> to vector<8xf32>
    %329 = vector.shape_cast %328 : vector<8xf32> to vector<8x1xf32>
    %330 = vector.broadcast %329 : vector<8x1xf32> to vector<8x16xf32>
    %331 = arith.subf %327, %330 : vector<8x16xf32>
    %332 = math.exp %331 : vector<8x16xf32>
    %cst_96 = arith.constant dense<0.000000e+00> : vector<8xf32>
    %333 = vector.multi_reduction <add>, %332, %cst_96 [1] : vector<8x16xf32> to vector<8xf32>
    %334 = vector.shape_cast %333 : vector<8xf32> to vector<8x1xf32>
    %335 = tpu.reciprocal %334 : vector<8x1xf32> -> vector<8x1xf32>
    %336 = vector.broadcast %335 : vector<8x1xf32> to vector<8x16xf32>
    %337 = arith.mulf %332, %336 : vector<8x16xf32>
    %338 = vector.extract_strided_slice %288 {offsets = [0, 16], sizes = [16, 8], strides = [1, 1]} : vector<16x32xf32> to vector<16x8xf32>
    %cst_97 = arith.constant dense<0.000000e+00> : vector<8x8xf32>
    %339 = tpu.matmul %337, %338, %cst_97 {dimension_numbers = #tpu.dot_dimension_numbers<[1], [0], [0], [1], [0, 0, 1, 1], [], []>} : vector<8x16xf32>, vector<16x8xf32>, vector<8x8xf32> -> vector<8x8xf32>
    %340 = vector.extract_strided_slice %286 {offsets = [0, 24], sizes = [8, 8], strides = [1, 1]} : vector<8x32xf32> to vector<8x8xf32>
    %341 = vector.extract_strided_slice %287 {offsets = [0, 24], sizes = [16, 8], strides = [1, 1]} : vector<16x32xf32> to vector<16x8xf32>
    %cst_98 = arith.constant dense<0.000000e+00> : vector<8x16xf32>
    %342 = tpu.matmul %340, %341, %cst_98 {dimension_numbers = #tpu.dot_dimension_numbers<[1], [1], [0], [0], [0, 0, 1, 0], [], []>} : vector<8x8xf32>, vector<16x8xf32>, vector<8x16xf32> -> vector<8x16xf32>
    %cst_99 = arith.constant 0.176776692 : f32
    %343 = vector.broadcast %cst_99 : f32 to vector<8x16xf32>
    %344 = arith.mulf %342, %343 : vector<8x16xf32>
    %cst_100 = arith.constant dense<0xFF800000> : vector<8xf32>
    %345 = vector.multi_reduction <maximumf>, %344, %cst_100 [1] : vector<8x16xf32> to vector<8xf32>
    %346 = vector.shape_cast %345 : vector<8xf32> to vector<8x1xf32>
    %347 = vector.broadcast %346 : vector<8x1xf32> to vector<8x16xf32>
    %348 = arith.subf %344, %347 : vector<8x16xf32>
    %349 = math.exp %348 : vector<8x16xf32>
    %cst_101 = arith.constant dense<0.000000e+00> : vector<8xf32>
    %350 = vector.multi_reduction <add>, %349, %cst_101 [1] : vector<8x16xf32> to vector<8xf32>
    %351 = vector.shape_cast %350 : vector<8xf32> to vector<8x1xf32>
    %352 = tpu.reciprocal %351 : vector<8x1xf32> -> vector<8x1xf32>
    %353 = vector.broadcast %352 : vector<8x1xf32> to vector<8x16xf32>
    %354 = arith.mulf %349, %353 : vector<8x16xf32>
    %355 = vector.extract_strided_slice %288 {offsets = [0, 24], sizes = [16, 8], strides = [1, 1]} : vector<16x32xf32> to vector<16x8xf32>
    %cst_102 = arith.constant dense<0.000000e+00> : vector<8x8xf32>
    %356 = tpu.matmul %354, %355, %cst_102 {dimension_numbers = #tpu.dot_dimension_numbers<[1], [0], [0], [1], [0, 0, 1, 1], [], []>} : vector<8x16xf32>, vector<16x8xf32>, vector<8x8xf32> -> vector<8x8xf32>
    %357 = tpu.concatenate %305, %322, %339, %356 in 1 : vector<8x8xf32>, vector<8x8xf32>, vector<8x8xf32>, vector<8x8xf32> -> vector<8x32xf32>
    %cst_103 = arith.constant dense<0.000000e+00> : vector<8x32xf32>
    %358 = tpu.matmul %357, %211, %cst_103 {dimension_numbers = #tpu.dot_dimension_numbers<[1], [0], [0], [1], [0, 0, 1, 1], [], []>} : vector<8x32xf32>, vector<32x32xf32>, vector<8x32xf32> -> vector<8x32xf32>
    %359 = tpu.concatenate %303, %320, %337, %354 in 1 : vector<8x16xf32>, vector<8x16xf32>, vector<8x16xf32>, vector<8x16xf32> -> vector<8x64xf32>
    %360 = tpu.concatenate %284, %358 in 0 : vector<8x32xf32>, vector<8x32xf32> -> vector<16x32xf32>
    %361 = tpu.concatenate %285, %359 in 0 : vector<8x64xf32>, vector<8x64xf32> -> vector<16x64xf32>
    %362 = arith.addf %203, %360 : vector<16x32xf32>
    %363 = vector.broadcast %5 : vector<1x32xf32> to vector<16x32xf32>
    %364 = arith.addf %362, %363 : vector<16x32xf32>
    %cst_104 = arith.constant dense<0.000000e+00> : vector<16xf32>
    %365 = vector.multi_reduction <add>, %364, %cst_104 [1] : vector<16x32xf32> to vector<16xf32>
    %366 = vector.shape_cast %365 : vector<16xf32> to vector<16x1xf32>
    %cst_105 = arith.constant 3.200000e+01 : f32
    %367 = vector.broadcast %cst_105 : f32 to vector<16x1xf32>
    %368 = arith.divf %366, %367 : vector<16x1xf32>
    %369 = vector.broadcast %368 : vector<16x1xf32> to vector<16x32xf32>
    %370 = arith.subf %364, %369 : vector<16x32xf32>
    %371 = arith.mulf %370, %370 : vector<16x32xf32>
    %cst_106 = arith.constant dense<0.000000e+00> : vector<16xf32>
    %372 = vector.multi_reduction <add>, %371, %cst_106 [1] : vector<16x32xf32> to vector<16xf32>
    %373 = vector.shape_cast %372 : vector<16xf32> to vector<16x1xf32>
    %cst_107 = arith.constant 3.200000e+01 : f32
    %374 = vector.broadcast %cst_107 : f32 to vector<16x1xf32>
    %375 = arith.divf %373, %374 : vector<16x1xf32>
    %376 = vector.broadcast %368 : vector<16x1xf32> to vector<16x32xf32>
    %377 = arith.subf %364, %376 : vector<16x32xf32>
    %cst_108 = arith.constant 9.99999974E-6 : f32
    %378 = vector.broadcast %cst_108 : f32 to vector<16x1xf32>
    %379 = arith.addf %375, %378 : vector<16x1xf32>
    %380 = math.rsqrt %379 : vector<16x1xf32>
    %381 = vector.broadcast %380 : vector<16x1xf32> to vector<16x32xf32>
    %382 = arith.mulf %377, %381 : vector<16x32xf32>
    %383 = vector.broadcast %9 : vector<1x32xf32> to vector<16x32xf32>
    %384 = arith.mulf %382, %383 : vector<16x32xf32>
    %385 = vector.broadcast %10 : vector<1x32xf32> to vector<16x32xf32>
    %386 = arith.addf %384, %385 : vector<16x32xf32>
    %c0_109 = arith.constant 0 : index
    %c0_110 = arith.constant 0 : index
    %387 = vector.load %arg6[%c0_109, %c0_110] : memref<32x64xf32, #tpu.memory_space<vmem>>, vector<32x64xf32>
    %cst_111 = arith.constant dense<0.000000e+00> : vector<16x64xf32>
    %388 = tpu.matmul %386, %387, %cst_111 {dimension_numbers = #tpu.dot_dimension_numbers<[1], [0], [0], [1], [0, 0, 1, 1], [], []>} : vector<16x32xf32>, vector<32x64xf32>, vector<16x64xf32> -> vector<16x64xf32>
    %389 = vector.broadcast %13 : vector<1x64xf32> to vector<16x64xf32>
    %390 = arith.addf %388, %389 : vector<16x64xf32>
    %cst_112 = arith.constant 0.000000e+00 : f32
    %391 = vector.broadcast %cst_112 : f32 to vector<16x64xf32>
    %392 = arith.maximumf %390, %391 : vector<16x64xf32>
    %c0_113 = arith.constant 0 : index
    %c0_114 = arith.constant 0 : index
    %393 = vector.load %arg7[%c0_113, %c0_114] : memref<64x32xf32, #tpu.memory_space<vmem>>, vector<64x32xf32>
    %cst_115 = arith.constant dense<0.000000e+00> : vector<16x32xf32>
    %394 = tpu.matmul %392, %393, %cst_115 {dimension_numbers = #tpu.dot_dimension_numbers<[1], [0], [0], [1], [0, 0, 1, 1], [], []>} : vector<16x64xf32>, vector<64x32xf32>, vector<16x32xf32> -> vector<16x32xf32>
    %395 = vector.broadcast %6 : vector<1x32xf32> to vector<16x32xf32>
    %396 = arith.addf %394, %395 : vector<16x32xf32>
    %397 = arith.addf %386, %396 : vector<16x32xf32>
    %cst_116 = arith.constant dense<0.000000e+00> : vector<16xf32>
    %398 = vector.multi_reduction <add>, %397, %cst_116 [1] : vector<16x32xf32> to vector<16xf32>
    %399 = vector.shape_cast %398 : vector<16xf32> to vector<16x1xf32>
    %cst_117 = arith.constant 3.200000e+01 : f32
    %400 = vector.broadcast %cst_117 : f32 to vector<16x1xf32>
    %401 = arith.divf %399, %400 : vector<16x1xf32>
    %402 = vector.broadcast %401 : vector<16x1xf32> to vector<16x32xf32>
    %403 = arith.subf %397, %402 : vector<16x32xf32>
    %404 = arith.mulf %403, %403 : vector<16x32xf32>
    %cst_118 = arith.constant dense<0.000000e+00> : vector<16xf32>
    %405 = vector.multi_reduction <add>, %404, %cst_118 [1] : vector<16x32xf32> to vector<16xf32>
    %406 = vector.shape_cast %405 : vector<16xf32> to vector<16x1xf32>
    %cst_119 = arith.constant 3.200000e+01 : f32
    %407 = vector.broadcast %cst_119 : f32 to vector<16x1xf32>
    %408 = arith.divf %406, %407 : vector<16x1xf32>
    %409 = vector.broadcast %401 : vector<16x1xf32> to vector<16x32xf32>
    %410 = arith.subf %397, %409 : vector<16x32xf32>
    %cst_120 = arith.constant 9.99999974E-6 : f32
    %411 = vector.broadcast %cst_120 : f32 to vector<16x1xf32>
    %412 = arith.addf %408, %411 : vector<16x1xf32>
    %413 = math.rsqrt %412 : vector<16x1xf32>
    %414 = vector.broadcast %413 : vector<16x1xf32> to vector<16x32xf32>
    %415 = arith.mulf %410, %414 : vector<16x32xf32>
    %416 = vector.broadcast %11 : vector<1x32xf32> to vector<16x32xf32>
    %417 = arith.mulf %415, %416 : vector<16x32xf32>
    %418 = vector.broadcast %12 : vector<1x32xf32> to vector<16x32xf32>
    %419 = arith.addf %417, %418 : vector<16x32xf32>
    %420 = tpu.concatenate %419, %178, %361 in 1 : vector<16x32xf32>, vector<16x32xf32>, vector<16x64xf32> -> vector<16x128xf32>
    %c0_121 = arith.constant 0 : index
    %c0_122 = arith.constant 0 : index
    %421 = vector.load %arg10[%c0_121, %c0_122] : memref<16x128xf32, #tpu.memory_space<vmem>>, vector<16x128xf32>
    tpu.vector_store %arg10[%c0_121, %c0_122], %420 {strides = array<i32>} : memref<16x128xf32, #tpu.memory_space<vmem>>, vector<16x128xf32>,
    return
  }
  func.func @transform_0(%arg0: i32) -> (i32, i32) {
    %c0_i32 = arith.constant 0 : i32
    %c0_i32_0 = arith.constant 0 : i32
    %c0_i32_1 = arith.constant 0 : i32
    return %c0_i32, %c0_i32_0 : i32, i32
  }
  func.func @transform_1(%arg0: i32) -> (i32, i32) {
    %c0_i32 = arith.constant 0 : i32
    %c0_i32_0 = arith.constant 0 : i32
    %c0_i32_1 = arith.constant 0 : i32
    return %c0_i32, %c0_i32_0 : i32, i32
  }
  func.func @transform_2(%arg0: i32) -> (i32, i32) {
    %c0_i32 = arith.constant 0 : i32
    %c0_i32_0 = arith.constant 0 : i32
    %c0_i32_1 = arith.constant 0 : i32
    return %c0_i32, %c0_i32_0 : i32, i32
  }
  func.func @transform_3(%arg0: i32) -> (i32, i32) {
    %c0_i32 = arith.constant 0 : i32
    %c0_i32_0 = arith.constant 0 : i32
    %c0_i32_1 = arith.constant 0 : i32
    return %c0_i32, %c0_i32_0 : i32, i32
  }
  func.func @transform_4(%arg0: i32) -> (i32, i32) {
    %c0_i32 = arith.constant 0 : i32
    %c0_i32_0 = arith.constant 0 : i32
    %c0_i32_1 = arith.constant 0 : i32
    return %c0_i32, %c0_i32_0 : i32, i32
  }
  func.func @transform_5(%arg0: i32) -> (i32, i32) {
    %c0_i32 = arith.constant 0 : i32
    %c0_i32_0 = arith.constant 0 : i32
    %c0_i32_1 = arith.constant 0 : i32
    return %c0_i32, %c0_i32_0 : i32, i32
  }
  func.func @transform_6(%arg0: i32) -> (i32, i32) {
    %c0_i32 = arith.constant 0 : i32
    %c0_i32_0 = arith.constant 0 : i32
    %c0_i32_1 = arith.constant 0 : i32
    return %c0_i32, %c0_i32_0 : i32, i32
  }
  func.func @transform_7(%arg0: i32) -> (i32, i32) {
    %c0_i32 = arith.constant 0 : i32
    %c0_i32_0 = arith.constant 0 : i32
    %c0_i32_1 = arith.constant 0 : i32
    return %c0_i32, %c0_i32_0 : i32, i32
  }
  func.func @transform_8(%arg0: i32) -> (i32, i32) {
    %c0_i32 = arith.constant 0 : i32
    %c0_i32_0 = arith.constant 0 : i32
    %c0_i32_1 = arith.constant 0 : i32
    return %c0_i32, %c0_i32_0 : i32, i32
  }
  func.func @transform_9(%arg0: i32) -> (i32, i32) {
    %c0_i32 = arith.constant 0 : i32
    %c0_i32_0 = arith.constant 0 : i32
    %c0_i32_1 = arith.constant 0 : i32
    return %c0_i32, %c0_i32_0 : i32, i32
  }
}

</mosaic_0001>

<bundles_post_ra>
// kernel: decoder_layer.1
= control target key start
LH: loop header
LB: loop body
LE: loop exit
PB: predicated region body
PF: predicated region fallthrough
CT: control target
= control target key end

     0   :  { %14 = vsyncpa [#allocation3], 0  ;;  %s5576_s0 = inlined_call_operand.hbm [shape: f32[16,32], index: 0, kind: input, shape index: {}]   ;;  %s5577_s1 = inlined_call_operand.vmem [shape: f32[32,32], index: 1, kind: input, shape index: {}]   ;;  %s5578_s2 = inlined_call_operand.hbm [shape: f32[8,8], index: 2, kind: input, shape index: {}]   ;;  %s5579_s3 = inlined_call_operand.vmem [shape: f32[32,128], index: 3, kind: input, shape index: {}]   ;;  %s5580_s4 = inlined_call_operand.vmem [shape: f32[32,128], index: 4, kind: input, shape index: {}]   ;;  %s5581_s5 = inlined_call_operand.hbm [shape: f32[32,64], index: 5, kind: input, shape index: {}]   ;;  %s5582_s6 = inlined_call_operand.vmem [shape: f32[64,32], index: 6, kind: input, shape index: {}]   ;;  %s5583_s7 = inlined_call_operand.hbm [shape: f32[9,32], index: 7, kind: input, shape index: {}]   ;;  %s5584_s8 = inlined_call_operand.vmem [shape: f32[1,64], index: 8, kind: input, shape index: {}]   ;;  %s5585_s9 = inlined_call_operand.vmem [shape: f32[16,128], index: 9, kind: output, shape index: {}]  }
   0x1   :  { %15 = vsyncpa [#allocation5], 0 }
   0x2   :  { %16 = vsyncpa [#allocation8], 0  ;;  %s4806_s30 = smov [#allocation4]   ;;  %s4807_s11 = smov [#allocation2]  }
   0x3   :  { %s37_s10 = sshll.u32 %s4806_s30, 4  ;;  %s22_s12 = sshll.u32 %s4807_s11, 4  ;;  %s38_s10 = int_to_ptr.vmem [resolvable:$true] %s37_s10  ;;  %s4879_s12 = int_to_ptr.vmem [resolvable:$true] %s22_s12 }
   0x4   :  { %s4712_s15 = scalar_lea.hbm %s5578_s2, 128 }
   0x5   :  { %p4713_p0 = scmp.ne.s32.totalorder %s5578_s2, %s4712_s15  ;;  %p4716_p1 = scmp.lt.u32.totalorder %s4712_s15, %s5578_s2 }
   0x7   :  { %p4718_p2 = pnand %p4716_p1, %p4713_p0 }
   0x9   :  { %4721 = shalt.err (!%p4718_p2)
}
   0xa   :  { %s4722_s20 = scalar_lea.vmem %s38_s10, 128  ;;  %p4727_p4 = scmp.lt.s32.totalorder %s38_s10, %s38_s10 }
   0xb   :  { %p4723_p3 = scmp.ne.s32.totalorder %s38_s10, %s4722_s20  ;;  %p4728_p5 = scmp.lt.s32.totalorder %s4722_s20, %s4722_s20 }
   0xd   :  { %p4729_p6 = por %p4728_p5, %p4727_p4 }
   0xf   :  { %p4730_p7 = pnand %p4729_p6, %p4723_p3 }
  0x11   :  { %4733 = shalt.err (!%p4730_p7)
}
  0x12   :  { %40 = dma.hbm_to_vmem [thread:$0]  %s5578_s2, 128, %s38_s10, [#allocation5]  }
  0x13   :  { %s4734_s25 = scalar_lea.hbm %s5576_s0, 256 }
  0x14   :  { %p4735_p8 = scmp.ne.s32.totalorder %s5576_s0, %s4734_s25  ;;  %p4738_p9 = scmp.lt.u32.totalorder %s4734_s25, %s5576_s0 }
  0x16   :  { %p4740_p10 = pnand %p4738_p9, %p4735_p8 }
  0x18   :  { %4743 = shalt.err (!%p4740_p10)
}
  0x19   :  { %s4744_s30 = scalar_lea.vmem %s4879_s12, 256  ;;  %p4749_p12 = scmp.lt.s32.totalorder %s4879_s12, %s4879_s12 }
  0x1a   :  { %p4745_p11 = scmp.ne.s32.totalorder %s4879_s12, %s4744_s30  ;;  %p4750_p13 = scmp.lt.s32.totalorder %s4744_s30, %s4744_s30 }
  0x1c   :  { %p4751_p0 = por %p4750_p13, %p4749_p12 }
  0x1e   :  { %p4752_p1 = pnand %p4751_p0, %p4745_p11 }
  0x20   :  { %4755 = shalt.err (!%p4752_p1)
}
  0x21   :  { %s4808_s2 = smov 128   ;;  %s4809_s10 = smov 8  }
  0x22   :  { %28 = dma.hbm_to_vmem [thread:$0]  %s5576_s0, 256, %s4879_s12, [#allocation3], %s4808_s2, %s4808_s2, %s4809_s10  }
  0x23   :  { %s4810_s14 = smov [#allocation6]   ;;  %s4811_s16 = smov [#allocation7]  }
  0x24   :  { %s50_s15 = sshll.u32 %s4810_s14, 4  ;;  %s64_s17 = sshll.u32 %s4811_s16, 4  ;;  %s51_s15 = int_to_ptr.vmem [resolvable:$true] %s50_s15  ;;  %s4913_s17 = int_to_ptr.vmem [resolvable:$true] %s64_s17 }
  0x25   :  { %s4756_s20 = scalar_lea.hbm %s5581_s5, 512 }
  0x26   :  { %p4757_p2 = scmp.ne.s32.totalorder %s5581_s5, %s4756_s20  ;;  %p4760_p3 = scmp.lt.u32.totalorder %s4756_s20, %s5581_s5 }
  0x28   :  { %p4762_p4 = pnand %p4760_p3, %p4757_p2 }
  0x2a   :  { %4765 = shalt.err (!%p4762_p4)
}
  0x2b   :  { %s4766_s0 = scalar_lea.vmem %s51_s15, 512  ;;  %p4771_p6 = scmp.lt.s32.totalorder %s51_s15, %s51_s15 }
  0x2c   :  { %p4767_p5 = scmp.ne.s32.totalorder %s51_s15, %s4766_s0  ;;  %p4772_p7 = scmp.lt.s32.totalorder %s4766_s0, %s4766_s0 }
  0x2e   :  { %p4773_p8 = por %p4772_p7, %p4771_p6 }
  0x30   :  { %p4774_p9 = pnand %p4773_p8, %p4767_p5 }
  0x32   :  { %4777 = shalt.err (!%p4774_p9)
}
  0x33   :  { %56 = dma.hbm_to_vmem [thread:$0]  %s5581_s5, 512, %s51_s15, [#allocation5], %s4808_s2, %s4808_s2, %s4809_s10  }
  0x34   :  { %s4778_s28 = scalar_lea.hbm %s5583_s7, 256 }
  0x35   :  { %p4779_p10 = scmp.ne.s32.totalorder %s5583_s7, %s4778_s28  ;;  %p4782_p11 = scmp.lt.u32.totalorder %s4778_s28, %s5583_s7 }
  0x37   :  { %p4784_p12 = pnand %p4782_p11, %p4779_p10 }
  0x39   :  { %4787 = shalt.err (!%p4784_p12)
}
  0x3a   :  { %s4788_s14 = scalar_lea.vmem %s4913_s17, 256  ;;  %p4793_p0 = scmp.lt.s32.totalorder %s4913_s17, %s4913_s17 }
  0x3b   :  { %p4789_p13 = scmp.ne.s32.totalorder %s4913_s17, %s4788_s14  ;;  %p4794_p1 = scmp.lt.s32.totalorder %s4788_s14, %s4788_s14 }
  0x3d   :  { %p4795_p2 = por %p4794_p1, %p4793_p0 }
  0x3f   :  { %p4796_p3 = pnand %p4795_p2, %p4789_p13 }
  0x41   :  { %4799 = shalt.err (!%p4796_p3)
}
  0x42   :  { %70 = dma.hbm_to_vmem [thread:$0]  %s5583_s7, 256, %s4913_s17, [#allocation8], %s4808_s2, %s4808_s2, %s4809_s10  }
  0x43   :  { %4800 = dma.done.wait [#allocation3], 256  }
  0x44   :  { %4801 = vsyncadd [#allocation3], 4294967040 }
  0x45   :  { %4802 = dma.done.wait [#allocation5], 640  }
  0x46   :  { %4803 = vsyncadd [#allocation5], 4294966656 }
  0x47   :  { %4804 = dma.done.wait [#allocation8], 256  }
  0x48   :  { %4805 = vsyncadd [#allocation8], 4294967040  ;;  %vm99_vm0 = vcmask 261120   ;;  %v4953_v0 = vld [vmem:[%s5579_s3] sm:$0xff]  ;;  %v4958_v1 = vld [vmem:[%s5579_s3 + $0x8] sm:$0xff]  ;;  %v4812_v9 = vmov 0.0  }
  0x49   :  { %v4963_v2 = vld [vmem:[%s5579_s3 + $0x10] sm:$0xff]  ;;  %v4535_v3 = vpack.i.bf16 %v4958_v1, %v4953_v0  ;;  %v4384_v4 = vpack.c.bf16 %v4958_v1, %v4953_v0  ;;  %v4972_v5 = vld [vmem:[%s5579_s3 + $0x18] sm:$0xff]  ;;  %v4974_v6 = vld [vmem:[#allocation2] sm:$0xff]  ;;  %4103 = vmatprep.subr.mxu0 %v4812_v9  ;;  %vm4813_vm1 = vmmov 0   ;;  %s4814_s3 = smov 120   ;;  %s4815_s17 = smov 96  }
  0x4a   :  { %v4388_v7 = vpack.c.bf16 %v4972_v5, %v4963_v2  ;;  %4090 = vmatprep.mubr.msk.f32.mxu1 %vm99_vm0, %v4974_v6  ;;  %v4980_v8 = vld [vmem:[#allocation2 + $0x8] sm:$0xff]  ;;  %4105 = vmatprep.mubr.msk.f32.mxu0 %vm4813_vm1, %v4812_v9  ;;  %s4816_s23 = smov 80   ;;  %s4817_s24 = smov 88   ;;  %vm184_vm2 = vcmask 64512   ;;  %v5028_v20 = vld [vmem:[#allocation4] sm:$0xff]  ;;  %v4540_v60 = vpack.i.bf16 %v4972_v5, %v4963_v2  ;;  %vm862_vm3 = vcmask 130048  }
  0x4b   :  { %4385 = vmatprep.subr.bf16.mxu1 %v4384_v4  ;;  %s4818_s0 = smov 72   ;;  %s4819_s12 = smov 112   ;;  %vm864_vm4 = vcmask 195584   ;;  %vm5258_vm5 = vmpackc.low %vm184_vm2, %vm184_vm2  ;;  %vm3721_vm6 = vcmask 523264   ;;  %vm2779_vm7 = vcmask 392192  }
  0x4c   :  { %4387 = vmatpush3.bf16.msra.mxu1 %v4384_v4  ;;  %s4820_s25 = smov 104   ;;  %s4821_s26 = smov 56  }
  0x4d   :  { %4389 = vmatprep.subr.bf16.mxu1 %v4388_v7  ;;  %s4822_s27 = smov 64   ;;  %s4823_s28 = smov 48  }
  0x4e   :  { %s4824_s29 = smov 32   ;;  %s4825_s30 = smov 40  }
  0x4f   :  { %s4827_s11 = smov 16   ;;  %s4828_s13 = smov 24  }
  0x50   :  { %4391 = vmatpush3.bf16.msra.mxu1 %v4388_v7 }
  0x51   :  { %4093 = vmatprep.subr.mxu1 %v4812_v9 }
  0x53   :  { %4091 = vmatmul.mubr.msk.f32.vlgmr.msra.gmra.mrb[0].mxu1 %vm99_vm0, %v4980_v8 }
  0x54   :  { %4095 = vmatprep.mubr.msk.f32.mxu1 %vm4813_vm1, %v4812_v9 }
 0x126   :  { %v4990_v10 = vpop.f32.mrb[0].mxu1 }
 0x127   :  { %v4992_v11 = vpop.f32.mrb[1].mxu1 }
 0x128   :  { %348 = vrot.lane.b32.xlu1 %v4992_v11, %s4814_s3  ;;  %182 = vrot.lane.b32.xlu0 %v4992_v11, %s4815_s17 }
 0x12c   :  { %517 = vrot.lane.b32.xlu1 %v4992_v11, %s4816_s23  ;;  %350 = vrot.lane.b32.xlu0 %v4992_v11, %s4817_s24 }
 0x130   :  { %684 = vrot.lane.b32.xlu1 %v4992_v11, %s4818_s0  ;;  %515 = vrot.lane.b32.xlu0 %v4992_v11, %s4819_s12 }
 0x134   :  { %682 = vrot.lane.b32.xlu0 %v4992_v11, %s4820_s25 }
 0x19a   :  { %v349_v12 = vpop.permute.xlu1 %348  ;;  %v183_v13 = vpop.permute.xlu0 %182 }
 0x19b   :  { %4094 = vmatpush3.xpose.msk.msra.mxu1 %vm184_vm2, %v183_v13 }
 0x19c   :  { %4098 = vmatprep.subr.mxu1 %v4812_v9 }
 0x19e   :  { %4096 = vmatmul.mubr.msk.f32.vlgmr.msra.gmra.mrb[2].mxu1 %vm184_vm2, %v4992_v11  ;;  %v351_v14 = vpop.permute.xlu0 %350  ;;  %v518_v15 = vpop.permute.xlu1 %517 }
 0x19f   :  { %4104 = vmatpush3.xpose.msk.msra.mxu0 %vm184_vm2, %v351_v14  ;;  %4100 = vmatprep.mubr.msk.f32.mxu1 %vm4813_vm1, %v4812_v9 }
 0x1a0   :  { %4113 = vmatprep.subr.mxu0 %v4812_v9 }
 0x1a2   :  { %4106 = vmatmul.mubr.msk.f32.vlgmr.msra.gmra.mrb[0].mxu0 %vm184_vm2, %v349_v12  ;;  %v516_v16 = vpop.permute.xlu0 %515  ;;  %v685_v17 = vpop.permute.xlu1 %684 }
 0x1a3   :  { %4114 = vmatpush3.xpose.msk.msra.mxu0 %vm184_vm2, %v518_v15  ;;  %4115 = vmatprep.mubr.msk.f32.mxu0 %vm4813_vm1, %v4812_v9 }
 0x1a4   :  { %4123 = vmatprep.subr.mxu0 %v4812_v9 }
 0x1a6   :  { %4116 = vmatmul.mubr.msk.f32.vlgmr.msra.gmra.mrb[2].mxu0 %vm184_vm2, %v516_v16  ;;  %v683_v18 = vpop.permute.xlu0 %682 }
 0x1a7   :  { %4124 = vmatpush3.xpose.msk.msra.mxu0 %vm184_vm2, %v685_v17  ;;  %4125 = vmatprep.mubr.msk.f32.mxu0 %vm4813_vm1, %v4812_v9 }
 0x1aa   :  { %4126 = vmatmul.mubr.msk.f32.vlgmr.msra.gmra.mrb[4].mxu0 %vm184_vm2, %v683_v18 }
 0x1ab   :  { %4141 = vmatprep.mubr.msk.f32.mxu0 %vm4813_vm1, %v4812_v9 }
 0x271   :  { %v255_v19 = vpop.f32.mrb[2].mxu1 }
 0x272   :  { %v259_v21 = vmul.f32 0.17677669, %v255_v19  ;;  %v4097_v22 = vpop.f32.mrb[3].mxu1 }
 0x274   :  { %v260_v23 = vadd.f32 %v259_v21, %v5028_v20 }
 0x275   :  { %v422_v24 = vpop.f32.mrb[0].mxu0 }
 0x276   :  { %v426_v25 = vmul.f32 0.17677669, %v422_v24  ;;  %v4107_v26 = vpop.f32.mrb[1].mxu0  ;;  %v261_v27 = vsel %vm184_vm2, %v260_v23, -inf }
 0x277   :  { %262 = vmax.xlane.f32.xlu1 %v261_v27  ;;  %v4826_v26 = vmov 0.0|0.0  }
 0x278   :  { %v427_v28 = vadd.f32 %v426_v25, %v5028_v20  ;;  %4392 = vmatprep.subr.bf16.mxu0 %v4826_v26 }
 0x279   :  { %v589_v29 = vpop.f32.mrb[2].mxu0 }
 0x27a   :  { %v593_v30 = vmul.f32 0.17677669, %v589_v29  ;;  %v4117_v31 = vpop.f32.mrb[3].mxu0  ;;  %v428_v32 = vsel %vm184_vm2, %v427_v28, -inf }
 0x27b   :  { %429 = vmax.xlane.f32.xlu0 %v428_v32 }
 0x27c   :  { %v594_v33 = vadd.f32 %v593_v30, %v5028_v20 }
 0x27d   :  { %v756_v34 = vpop.f32.mrb[4].mxu0 }
 0x27e   :  { %v760_v35 = vmul.f32 0.17677669, %v756_v34  ;;  %v4127_v36 = vpop.f32.mrb[5].mxu0  ;;  %v595_v37 = vsel %vm184_vm2, %v594_v33, -inf }
 0x27f   :  { %596 = vmax.xlane.f32.xlu0 %v595_v37 }
 0x280   :  { %v761_v38 = vadd.f32 %v760_v35, %v5028_v20 }
 0x282   :  { %v762_v39 = vsel %vm184_vm2, %v761_v38, -inf }
 0x283   :  { %763 = vmax.xlane.f32.xlu1 %v762_v39 }
 0x294   :  { %439 = vrot.lane.b32.xlu1 %v4992_v11, %s4821_s26 }
 0x304   :  { %v263_v40 = vpop.xlane.xlu1 %262 }
 0x305   :  { %v264_v41 = vsub.f32 %v260_v23, %v263_v40 }
 0x307   :  { %v265_v42 = vmul.f32 1.442695, %v264_v41 }
 0x308   :  { %v430_v43 = vpop.xlane.xlu0 %429 }
 0x309   :  { %4635 = vpow2.f32 %v265_v42  ;;  %v431_v44 = vsub.f32 %v427_v28, %v430_v43 }
 0x30b   :  { %v432_v45 = vmul.f32 1.442695, %v431_v44 }
 0x30c   :  { %v597_v55 = vpop.xlane.xlu0 %596 }
 0x30d   :  { %4637 = vpow2.f32 %v432_v45  ;;  %v598_v56 = vsub.f32 %v594_v33, %v597_v55 }
 0x30f   :  { %v599_v57 = vmul.f32 1.442695, %v598_v56 }
 0x310   :  { %v764_v46 = vpop.xlane.xlu1 %763 }
 0x311   :  { %v765_v47 = vsub.f32 %v761_v38, %v764_v46 }
 0x313   :  { %v4636_v48 = vpop.eup %4635  ;;  %v766_v49 = vmul.f32 1.442695, %v765_v47 }
 0x314   :  { %v267_v50 = vsel %vm184_vm2, %v4636_v48, 0.0  ;;  %v440_v61 = vpop.permute.xlu1 %439 }
 0x315   :  { %4639 = vpow2.f32 %v766_v49  ;;  %268 = vadd.xlane.f32.xlu0 %v267_v50 }
 0x316   :  { %4641 = vpow2.f32 %v599_v57 }
 0x317   :  { %v4638_v51 = vpop.eup %4637 }
 0x318   :  { %v434_v52 = vsel %vm184_vm2, %v4638_v51, 0.0 }
 0x319   :  { %435 = vadd.xlane.f32.xlu1 %v434_v52 }
 0x31f   :  { %v4640_v53 = vpop.eup %4639 }
 0x320   :  { %v768_v54 = vsel %vm184_vm2, %v4640_v53, 0.0  ;;  %v4642_v58 = vpop.eup %4641 }
 0x321   :  { %769 = vadd.xlane.f32.xlu1 %v768_v54  ;;  %v601_v59 = vsel %vm184_vm2, %v4642_v58, 0.0 }
 0x32b   :  { %272 = vrot.lane.b32.xlu0 %v4992_v11, %s4822_s27 }
 0x332   :  { %606 = vrot.lane.b32.xlu1 %v4992_v11, %s4823_s28 }
 0x336   :  { %4536 = vrot.lane.b32.xlu1 %v4535_v3, %s4824_s29 }
 0x34a   :  { %602 = vadd.xlane.f32.xlu0 %v601_v59 }
 0x360   :  { %773 = vrot.lane.b32.xlu0 %v4992_v11, %s4825_s30 }
 0x364   :  { %4541 = vrot.lane.b32.xlu0 %v4540_v60, %s4824_s29 }
 0x368   :  { %968 = vrot.lane.b32.xlu0 %v4990_v10, %s4815_s17 }
 0x3a2   :  { %v269_v62 = vpop.xlane.xlu0 %268 }
 0x3a3   :  { %4643 = vrcp.f32 %v269_v62 }
 0x3a6   :  { %v436_v63 = vpop.xlane.xlu1 %435  ;;  %v273_v0 = vpop.permute.xlu0 %272 }
 0x3a7   :  { %4645 = vrcp.f32 %v436_v63  ;;  %4099 = vmatpush3.msra.mxu1 %v273_v0 }
 0x3a8   :  { %4108 = vmatprep.subr.mxu1 %v4812_v9 }
 0x3ad   :  { %v4644_v1 = vpop.eup %4643 }
 0x3ae   :  { %v770_v3 = vpop.xlane.xlu1 %769  ;;  %v5060_v4 = vmul.f32 %v4644_v1, %v4636_v48 }
 0x3b0   :  { %4101 = vmatmul.mubr.msk.f32.vlgmr.msra.gmra.mrb[4].mxu1 %vm184_vm2, %v5060_v4 }
 0x3b1   :  { %v4646_v2 = vpop.eup %4645  ;;  %4109 = vmatpush3.msra.mxu1 %v440_v61  ;;  %4110 = vmatprep.mubr.msk.f32.mxu1 %vm4813_vm1, %v4812_v9 }
 0x3b2   :  { %v5066_v5 = vmul.f32 %v4646_v2, %v4638_v51  ;;  %v607_v7 = vpop.permute.xlu1 %606  ;;  %4118 = vmatprep.subr.mxu1 %v4812_v9 }
 0x3b4   :  { %4111 = vmatmul.mubr.msk.f32.vlgmr.msra.gmra.mrb[6].mxu1 %vm184_vm2, %v5066_v5 }
 0x3b5   :  { %4119 = vmatpush3.msra.mxu1 %v607_v7  ;;  %4120 = vmatprep.mubr.msk.f32.mxu1 %vm4813_vm1, %v4812_v9 }
 0x3b6   :  { %4128 = vmatprep.subr.mxu1 %v4812_v9  ;;  %v4537_v19 = vpop.permute.xlu1 %4536 }
 0x3b7   :  { %v4539_v21 = vunpack.i.h.bf16 %v4537_v19  ;;  %v4538_v22 = vunpack.i.l.bf16 %v4537_v19 }
 0x3b9   :  { %v4393_v25 = vpack.c.bf16 %v4539_v21, %v4538_v22 }
 0x3bb   :  { %4394 = vmatpush3.bf16.msra.mxu0 %v4393_v25 }
 0x3bc   :  { %4395 = vmatprep.subr.bf16.mxu0 %v4826_v26 }
 0x3d7   :  { %v603_v11 = vpop.xlane.xlu0 %602 }
 0x3d8   :  { %4647 = vrcp.f32 %v603_v11 }
 0x3d9   :  { %4649 = vrcp.f32 %v770_v3 }
 0x3db   :  { %v774_v12 = vpop.permute.xlu0 %773 }
 0x3df   :  { %v4542_v16 = vpop.permute.xlu0 %4541 }
 0x3e0   :  { %v4544_v23 = vunpack.i.h.bf16 %v4542_v16  ;;  %v4543_v24 = vunpack.i.l.bf16 %v4542_v16 }
 0x3e2   :  { %v4648_v13 = vpop.eup %4647  ;;  %v4396_v27 = vpack.c.bf16 %v4544_v23, %v4543_v24 }
 0x3e3   :  { %v5074_v14 = vmul.f32 %v4648_v13, %v4642_v58  ;;  %v4650_v15 = vpop.eup %4649  ;;  %v969_v18 = vpop.permute.xlu0 %968 }
 0x3e4   :  { %v5080_v17 = vmul.f32 %v4650_v15, %v4640_v53  ;;  %4397 = vmatpush3.bf16.msra.mxu0 %v4396_v27 }
 0x3e5   :  { %4121 = vmatmul.mubr.msk.f32.vlgmr.msra.gmra.mrb[8].mxu1 %vm184_vm2, %v5074_v14  ;;  %4154 = vmatprep.subr.mxu0 %v4812_v9 }
 0x3e6   :  { %4129 = vmatpush3.msra.mxu1 %v774_v12  ;;  %4130 = vmatprep.mubr.msk.f32.mxu1 %vm4813_vm1, %v4812_v9 }
 0x3e7   :  { %4144 = vmatprep.subr.mxu1 %v4812_v9 }
 0x3e9   :  { %4131 = vmatmul.mubr.msk.f32.vlgmr.msra.gmra.mrb[10].mxu1 %vm184_vm2, %v5080_v17 }
 0x3ea   :  { %4146 = vmatprep.mubr.msk.f32.mxu1 %vm4813_vm1, %v4812_v9 }
 0x3ed   :  { %4145 = vmatpush3.xpose.msk.msra.mxu1 %vm184_vm2, %v969_v18 }
 0x3ee   :  { %4149 = vmatprep.subr.mxu1 %v4812_v9 }
 0x3f0   :  { %4147 = vmatmul.mubr.msk.f32.vlgmr.msra.gmra.mrb[12].mxu1 %vm184_vm2, %v4990_v10 }
 0x3f1   :  { %4151 = vmatprep.mubr.msk.f32.mxu1 %vm4813_vm1, %v4812_v9 }
 0x483   :  { %v344_v28 = vpop.f32.mrb[4].mxu1 }
 0x484   :  { %v4102_v29 = vpop.f32.mrb[5].mxu1 }
 0x487   :  { %v511_v30 = vpop.f32.mrb[6].mxu1 }
 0x488   :  { %850 = vrot.lane.b32.xlu1 %v511_v30, %s4809_s10  ;;  %v4112_v31 = vpop.f32.mrb[7].mxu1 }
 0x4b8   :  { %v678_v32 = vpop.f32.mrb[8].mxu1 }
 0x4b9   :  { %854 = vrot.lane.b32.xlu1 %v678_v32, %s4827_s11  ;;  %v4122_v33 = vpop.f32.mrb[9].mxu1 }
 0x4bc   :  { %v845_v34 = vpop.f32.mrb[10].mxu1 }
 0x4bd   :  { %1135 = vrot.lane.b32.xlu1 %v4990_v10, %s4817_s24  ;;  %858 = vrot.lane.b32.xlu0 %v845_v34, %s4828_s13  ;;  %v4132_v35 = vpop.f32.mrb[11].mxu1 }
 0x4c1   :  { %1302 = vrot.lane.b32.xlu1 %v4990_v10, %s4816_s23  ;;  %1133 = vrot.lane.b32.xlu0 %v4990_v10, %s4814_s3 }
 0x4c3   :  { %v1040_v36 = vpop.f32.mrb[12].mxu1 }
 0x4c4   :  { %v4148_v37 = vpop.f32.mrb[13].mxu1  ;;  %v1044_v38 = vmul.f32 0.17677669, %v1040_v36 }
 0x4c5   :  { %1469 = vrot.lane.b32.xlu1 %v4990_v10, %s4818_s0  ;;  %1300 = vrot.lane.b32.xlu0 %v4990_v10, %s4819_s12 }
 0x4c6   :  { %v1045_v39 = vadd.f32 %v1044_v38, %v5028_v20 }
 0x4c8   :  { %v1046_v40 = vsel %vm184_vm2, %v1045_v39, -inf }
 0x4c9   :  { %1467 = vrot.lane.b32.xlu0 %v4990_v10, %s4820_s25 }
 0x4e9   :  { %1047 = vmax.xlane.f32.xlu1 %v1046_v40 }
 0x4fa   :  { %v851_v41 = vpop.permute.xlu1 %850 }
 0x4fb   :  { %v861_v43 = vsel %vm184_vm2, %v344_v28, %v851_v41 }
 0x52b   :  { %v855_v42 = vpop.permute.xlu1 %854 }
 0x52c   :  { %v863_v44 = vsel %vm862_vm3, %v861_v43, %v855_v42 }
 0x52f   :  { %v1136_v45 = vpop.permute.xlu1 %1135  ;;  %v859_v46 = vpop.permute.xlu0 %858 }
 0x530   :  { %v865_v47 = vsel %vm864_vm4, %v863_v44, %v859_v46 }
 0x531   :  { %4142 = vmatmul.mubr.msk.f32.vlgmr.msra.gmra.mrb[6].mxu0 %vm99_vm0, %v865_v47 }
 0x532   :  { %4155 = vmatpush3.xpose.msk.msra.mxu0 %vm184_vm2, %v1136_v45  ;;  %4156 = vmatprep.mubr.msk.f32.mxu0 %vm4813_vm1, %v4812_v9 }
 0x533   :  { %v1303_v48 = vpop.permute.xlu1 %1302  ;;  %v1134_v49 = vpop.permute.xlu0 %1133  ;;  %4164 = vmatprep.subr.mxu0 %v4812_v9 }
 0x535   :  { %4157 = vmatmul.mubr.msk.f32.vlgmr.msra.gmra.mrb[8].mxu0 %vm184_vm2, %v1134_v49 }
 0x536   :  { %4165 = vmatpush3.xpose.msk.msra.mxu0 %vm184_vm2, %v1303_v48  ;;  %4166 = vmatprep.mubr.msk.f32.mxu0 %vm4813_vm1, %v4812_v9 }
 0x537   :  { %v1470_v50 = vpop.permute.xlu1 %1469  ;;  %v1301_v51 = vpop.permute.xlu0 %1300  ;;  %4174 = vmatprep.subr.mxu0 %v4812_v9 }
 0x539   :  { %4167 = vmatmul.mubr.msk.f32.vlgmr.msra.gmra.mrb[10].mxu0 %vm184_vm2, %v1301_v51 }
 0x53a   :  { %4175 = vmatpush3.xpose.msk.msra.mxu0 %vm184_vm2, %v1470_v50  ;;  %4176 = vmatprep.mubr.msk.f32.mxu0 %vm4813_vm1, %v4812_v9 }
 0x53b   :  { %v1468_v52 = vpop.permute.xlu0 %1467  ;;  %4398 = vmatprep.subr.bf16.mxu0 %v4826_v26 }
 0x53d   :  { %4177 = vmatmul.mubr.msk.f32.vlgmr.msra.gmra.mrb[12].mxu0 %vm184_vm2, %v1468_v52 }
 0x53e   :  { %4400 = vmatpush3.bf16.msra.mxu0 %v4393_v25  ;;  %4192 = vmatprep.mubr.msk.f32.mxu0 %vm4813_vm1, %v4812_v9 }
 0x53f   :  { %4401 = vmatprep.subr.bf16.mxu0 %v4826_v26 }
 0x542   :  { %4403 = vmatpush3.bf16.msra.mxu0 %v4396_v27 }
 0x576   :  { %v1048_v53 = vpop.xlane.xlu1 %1047 }
 0x577   :  { %v1049_v54 = vsub.f32 %v1045_v39, %v1048_v53 }
 0x579   :  { %v1050_v55 = vmul.f32 1.442695, %v1049_v54 }
 0x57b   :  { %4651 = vpow2.f32 %v1050_v55 }
 0x585   :  { %v4652_v13 = vpop.eup %4651 }
 0x586   :  { %v1052_v16 = vsel %vm184_vm2, %v4652_v13, 0.0 }
 0x604   :  { %v5135_v56 = vpop.f32.mrb[6].mxu0 }
 0x605   :  { %v4143_v57 = vpop.f32.mrb[7].mxu0 }
 0x608   :  { %v1207_v58 = vpop.f32.mrb[8].mxu0 }
 0x609   :  { %v1211_v59 = vmul.f32 0.17677669, %v1207_v58  ;;  %v4158_v60 = vpop.f32.mrb[9].mxu0 }
 0x60b   :  { %v1212_v61 = vadd.f32 %v1211_v59, %v5028_v20  ;;  %v1736_v59 = vlaneseq }
 0x60c   :  { %v1374_v62 = vpop.f32.mrb[10].mxu0 }
 0x60d   :  { %v1378_v63 = vmul.f32 0.17677669, %v1374_v62  ;;  %v4168_v0 = vpop.f32.mrb[11].mxu0  ;;  %v1213_v1 = vsel %vm184_vm2, %v1212_v61, -inf  ;;  %v5183_v60 = vshrl.u32 %v1736_v59, 7  ;;  %v5186_v62 = vld [vmem:[#allocation7] sm:$0xff] }
 0x60e   :  { %1214 = vmax.xlane.f32.xlu0 %v1213_v1 }
 0x60f   :  { %v1379_v3 = vadd.f32 %v1378_v63, %v5028_v20  ;;  %v1734_v63 = vadd.f32 %v5135_v56, %v4974_v6 }
 0x610   :  { %v1541_v2 = vpop.f32.mrb[12].mxu0 }
 0x611   :  { %v1545_v7 = vmul.f32 0.17677669, %v1541_v2  ;;  %v4178_v11 = vpop.f32.mrb[13].mxu0  ;;  %v1380_v12 = vsel %vm184_vm2, %v1379_v3, -inf }
 0x612   :  { %1381 = vmax.xlane.f32.xlu0 %v1380_v12 }
 0x613   :  { %v1546_v15 = vadd.f32 %v1545_v7, %v5028_v20 }
 0x615   :  { %v1547_v18 = vsel %vm184_vm2, %v1546_v15, -inf }
 0x616   :  { %1053 = vadd.xlane.f32.xlu0 %v1052_v16  ;;  %1548 = vmax.xlane.f32.xlu1 %v1547_v18 }
 0x627   :  { %1224 = vrot.lane.b32.xlu1 %v4990_v10, %s4821_s26 }
 0x62c   :  { %1057 = vrot.lane.b32.xlu0 %v4990_v10, %s4822_s27 }
 0x69b   :  { %v1215_v19 = vpop.xlane.xlu0 %1214 }
 0x69c   :  { %v1216_v21 = vsub.f32 %v1212_v61, %v1215_v19  ;;  %v1738_v61 = vsub.s32 0, %v5183_v60 }
 0x69e   :  { %v1217_v22 = vmul.f32 1.442695, %v1216_v21  ;;  %v1739_v0 = vrot.slane %v5186_v62, %v1738_v61 }
 0x69f   :  { %v1382_v23 = vpop.xlane.xlu0 %1381 }
 0x6a0   :  { %4653 = vpow2.f32 %v1217_v22  ;;  %v1383_v24 = vsub.f32 %v1379_v3, %v1382_v23  ;;  %v1740_v1 = vadd.f32 %v1739_v0, %v1734_v63 }
 0x6a2   :  { %v1384_v25 = vmul.f32 1.442695, %v1383_v24  ;;  %v1742_v3 = vsel %vm99_vm0, %v1740_v1, 0.0 }
 0x6a3   :  { %v1054_v20 = vpop.xlane.xlu0 %1053  ;;  %v1549_v27 = vpop.xlane.xlu1 %1548 }
 0x6a4   :  { %4655 = vpow2.f32 %v1384_v25  ;;  %v1550_v28 = vsub.f32 %v1546_v15, %v1549_v27  ;;  %v1771_v25 = vsub.s32 3, %v5183_v60 }
 0x6a5   :  { %4657 = vrcp.f32 %v1054_v20 }
 0x6a6   :  { %v1551_v29 = vmul.f32 1.442695, %v1550_v28  ;;  %v1777_v28 = vsub.s32 4, %v5183_v60 }
 0x6a7   :  { %v1058_v30 = vpop.permute.xlu0 %1057  ;;  %v1225_v38 = vpop.permute.xlu1 %1224 }
 0x6a8   :  { %4659 = vpow2.f32 %v1551_v29  ;;  %4150 = vmatpush3.msra.mxu1 %v1058_v30  ;;  %v1772_v30 = vrot.slane %v5186_v62, %v1771_v25 }
 0x6a9   :  { %4159 = vmatprep.subr.mxu1 %v4812_v9 }
 0x6aa   :  { %v4654_v31 = vpop.eup %4653 }
 0x6ab   :  { %v1219_v32 = vsel %vm184_vm2, %v4654_v31, 0.0 }
 0x6ac   :  { %1220 = vadd.xlane.f32.xlu1 %v1219_v32 }
 0x6ae   :  { %v4656_v33 = vpop.eup %4655 }
 0x6af   :  { %v4658_v34 = vpop.eup %4657  ;;  %v1386_v35 = vsel %vm184_vm2, %v4656_v33, 0.0 }
 0x6b0   :  { %v5151_v36 = vmul.f32 %v4658_v34, %v4652_v13  ;;  %1387 = vadd.xlane.f32.xlu0 %v1386_v35  ;;  %v1778_v34 = vrot.slane %v5186_v62, %v1777_v28 }
 0x6b2   :  { %v4660_v37 = vpop.eup %4659  ;;  %4152 = vmatmul.mubr.msk.f32.vlgmr.msra.gmra.mrb[14].mxu1 %vm184_vm2, %v5151_v36 }
 0x6b3   :  { %4160 = vmatpush3.msra.mxu1 %v1225_v38  ;;  %v1553_v39 = vsel %vm184_vm2, %v4660_v37, 0.0  ;;  %4161 = vmatprep.mubr.msk.f32.mxu1 %vm4813_vm1, %v4812_v9  ;;  %v1782_v38 = vld [vmem:[%s5580_s4 + $0x8] sm:$0xff] }
 0x6b4   :  { %1554 = vadd.xlane.f32.xlu1 %v1553_v39  ;;  %4169 = vmatprep.subr.mxu1 %v4812_v9 }
 0x6c5   :  { %1391 = vrot.lane.b32.xlu1 %v4990_v10, %s4823_s28 }
 0x6c6   :  { %1558 = vrot.lane.b32.xlu0 %v4990_v10, %s4825_s30 }
 0x739   :  { %v1221_v40 = vpop.xlane.xlu1 %1220 }
 0x73a   :  { %4661 = vrcp.f32 %v1221_v40 }
 0x73d   :  { %v1388_v41 = vpop.xlane.xlu0 %1387 }
 0x73e   :  { %4663 = vrcp.f32 %v1388_v41 }
 0x741   :  { %v1555_v42 = vpop.xlane.xlu1 %1554  ;;  %v1559_v10 = vpop.permute.xlu0 %1558 }
 0x742   :  { %4665 = vrcp.f32 %v1555_v42 }
 0x744   :  { %v4662_v43 = vpop.eup %4661 }
 0x745   :  { %v5163_v44 = vmul.f32 %v4662_v43, %v4654_v31  ;;  %v1392_v45 = vpop.permute.xlu1 %1391 }
 0x747   :  { %4162 = vmatmul.mubr.msk.f32.vlgmr.msra.gmra.mrb[16].mxu1 %vm184_vm2, %v5163_v44 }
 0x748   :  { %v4664_v46 = vpop.eup %4663  ;;  %4170 = vmatpush3.msra.mxu1 %v1392_v45  ;;  %4171 = vmatprep.mubr.msk.f32.mxu1 %vm4813_vm1, %v4812_v9 }
 0x749   :  { %v5169_v47 = vmul.f32 %v4664_v46, %v4656_v33  ;;  %4179 = vmatprep.subr.mxu1 %v4812_v9 }
 0x74b   :  { %4172 = vmatmul.mubr.msk.f32.vlgmr.msra.gmra.mrb[18].mxu1 %vm184_vm2, %v5169_v47 }
 0x74c   :  { %v4666_v48 = vpop.eup %4665  ;;  %4180 = vmatpush3.msra.mxu1 %v1559_v10  ;;  %4181 = vmatprep.mubr.msk.f32.mxu1 %vm4813_vm1, %v4812_v9  ;;  %v1783_v10 = vld [vmem:[%s5580_s4 + $0x10] sm:$0xff] }
 0x74d   :  { %v5176_v49 = vmul.f32 %v4666_v48, %v4660_v37  ;;  %v1784_v48 = vld [vmem:[%s5580_s4 + $0x18] sm:$0xff] }
 0x74f   :  { %4182 = vmatmul.mubr.msk.f32.vlgmr.msra.gmra.mrb[20].mxu1 %vm184_vm2, %v5176_v49 }
 0x785   :  { %v1129_v50 = vpop.f32.mrb[14].mxu1 }
 0x786   :  { %v4153_v51 = vpop.f32.mrb[15].mxu1 }
 0x81a   :  { %v1296_v52 = vpop.f32.mrb[16].mxu1 }
 0x81b   :  { %1635 = vrot.lane.b32.xlu1 %v1296_v52, %s4809_s10  ;;  %v4163_v53 = vpop.f32.mrb[17].mxu1 }
 0x81c   :  { %v5224_v53 = vpack.i.bf16 %v1784_v48, %v1783_v10 }
 0x81e   :  { %v1463_v54 = vpop.f32.mrb[18].mxu1 }
 0x81f   :  { %1639 = vrot.lane.b32.xlu0 %v1463_v54, %s4827_s11  ;;  %v4173_v55 = vpop.f32.mrb[19].mxu1  ;;  %v87_v54 = vld [vmem:[%s5577_s1] sm:$0xff] }
 0x822   :  { %v1630_v57 = vpop.f32.mrb[20].mxu1 }
 0x823   :  { %1643 = vrot.lane.b32.xlu1 %v1630_v57, %s4828_s13  ;;  %v4183_v58 = vpop.f32.mrb[21].mxu1  ;;  %v4408_v57 = vpack.c.bf16 %v1784_v48, %v1783_v10 }
 0x83e   :  { %1743 = vadd.xlane.f32.xlu0 %v1742_v3 }
 0x88d   :  { %v1636_v2 = vpop.permute.xlu1 %1635 }
 0x88e   :  { %v1646_v11 = vsel %vm184_vm2, %v1129_v50, %v1636_v2  ;;  %v88_v2 = vld [vmem:[%s5577_s1 + $0x8] sm:$0xff] }
 0x891   :  { %v1640_v7 = vpop.permute.xlu0 %1639 }
 0x892   :  { %v1647_v12 = vsel %vm862_vm3, %v1646_v11, %v1640_v7 }
 0x895   :  { %v1644_v13 = vpop.permute.xlu1 %1643 }
 0x896   :  { %v1648_v15 = vsel %vm864_vm4, %v1647_v12, %v1644_v13 }
 0x897   :  { %4193 = vmatmul.mubr.msk.f32.vlgmr.msra.gmra.mrb[14].mxu0 %vm99_vm0, %v1648_v15  ;;  %v89_v15 = vld [vmem:[%s5577_s1 + $0x10] sm:$0xff] }
 0x898   :  { %4214 = vmatprep.mubr.msk.f32.mxu0 %vm99_vm0, %v87_v54 }
 0x8cb   :  { %v1744_v16 = vpop.xlane.xlu0 %1743 }
 0x8cc   :  { %v1749_v18 = vmul.f32 0.03125, %v1744_v16  ;;  %v90_v16 = vld [vmem:[%s5577_s1 + $0x18] sm:$0xff] }
 0x8ce   :  { %v1751_v6 = vsub.f32 %v1740_v1, %v1749_v18 }
 0x8d0   :  { %v1753_v56 = vmul.f32 %v1751_v6, %v1751_v6 }
 0x8d2   :  { %v1755_v19 = vsel %vm99_vm0, %v1753_v56, 0.0 }
 0x8d3   :  { %1756 = vadd.xlane.f32.xlu0 %v1755_v19 }
 0x960   :  { %v1757_v21 = vpop.xlane.xlu0 %1756 }
 0x961   :  { %v1761_v22 = vmul.f32 0.03125, %v1757_v21  ;;  %v3574_v21 = vsub.s32 1, %v5183_v60 }
 0x963   :  { %v1763_v23 = vadd.f32 1e-05, %v1761_v22 }
 0x965   :  { %4667 = vrsqrt.f32 %v1763_v23 }
 0x96a   :  { %v1718_v24 = vpop.f32.mrb[14].mxu0 }
 0x96b   :  { %v1735_v20 = vadd.f32 %v1718_v24, %v4980_v8  ;;  %v4194_v27 = vpop.f32.mrb[15].mxu0  ;;  %v1781_v8 = vld [vmem:[%s5580_s4] sm:$0xff] }
 0x96c   :  { %v5213_v39 = vpack.i.bf16 %v1782_v38, %v1781_v8  ;;  %v4404_v55 = vpack.c.bf16 %v1782_v38, %v1781_v8 }
 0x96d   :  { %v1741_v29 = vadd.f32 %v1739_v0, %v1735_v20 }
 0x96e   :  { %4405 = vmatprep.subr.bf16.mxu1 %v4404_v55 }
 0x96f   :  { %v4668_v31 = vpop.eup %4667  ;;  %v1745_v32 = vsel %vm99_vm0, %v1741_v29, 0.0  ;;  %4407 = vmatpush3.bf16.msra.mxu1 %v4404_v55 }
 0x970   :  { %1746 = vadd.xlane.f32.xlu1 %v1745_v32  ;;  %v1767_v33 = vmul.f32 %v4668_v31, %v1751_v6  ;;  %4409 = vmatprep.subr.bf16.mxu1 %v4408_v57 }
 0x972   :  { %v1773_v35 = vmul.f32 %v1772_v30, %v1767_v33 }
 0x973   :  { %4411 = vmatpush3.bf16.msra.mxu1 %v4408_v57 }
 0x974   :  { %v5203_v37 = vadd.f32 %v1778_v34, %v1773_v35  ;;  %4420 = vmatprep.subr.bf16.mxu1 %v4826_v26 }
 0x976   :  { %4203 = vmatprep.mubr.msk.f32.mxu1 %vm99_vm0, %v5203_v37 }
 0x981   :  { %4546 = vrot.lane.b32.xlu1 %v5213_v39, %s4815_s17 }
 0x9fd   :  { %v1747_v40 = vpop.xlane.xlu1 %1746 }
 0x9fe   :  { %v1750_v41 = vmul.f32 0.03125, %v1747_v40 }
 0xa00   :  { %v1752_v42 = vsub.f32 %v1741_v29, %v1750_v41 }
 0xa01   :  { %v4547_v46 = vpop.permute.xlu1 %4546 }
 0xa02   :  { %v1754_v43 = vmul.f32 %v1752_v42, %v1752_v42  ;;  %v4549_v50 = vunpack.i.h.bf16 %v4547_v46  ;;  %v4548_v51 = vunpack.i.l.bf16 %v4547_v46 }
 0xa04   :  { %v1758_v45 = vsel %vm99_vm0, %v1754_v43, 0.0  ;;  %v4412_v52 = vpack.c.bf16 %v4549_v50, %v4548_v51 }
 0xa05   :  { %1759 = vadd.xlane.f32.xlu0 %v1758_v45 }
 0xa06   :  { %4413 = vmatprep.subr.bf16.mxu0 %v4412_v52 }
 0xa07   :  { %4415 = vmatpush3.bf16.msra.mxu0 %v4412_v52 }
 0xa1b   :  { %4551 = vrot.lane.b32.xlu0 %v5224_v53, %s4815_s17 }
 0xa92   :  { %v1760_v58 = vpop.xlane.xlu0 %1759 }
 0xa93   :  { %v1762_v59 = vmul.f32 0.03125, %v1760_v58 }
 0xa95   :  { %v1764_v61 = vadd.f32 1e-05, %v1762_v59 }
 0xa96   :  { %v4552_v63 = vpop.permute.xlu0 %4551 }
 0xa97   :  { %4669 = vrsqrt.f32 %v1764_v61  ;;  %v4554_v0 = vunpack.i.h.bf16 %v4552_v63  ;;  %v4553_v1 = vunpack.i.l.bf16 %v4552_v63 }
 0xa99   :  { %v4416_v3 = vpack.c.bf16 %v4554_v0, %v4553_v1 }
 0xa9b   :  { %4417 = vmatprep.subr.bf16.mxu0 %v4416_v3 }
 0xa9c   :  { %4419 = vmatpush3.bf16.msra.mxu0 %v4416_v3 }
 0xa9d   :  { %4427 = vmatprep.subr.bf16.mxu0 %v4826_v26 }
 0xa9f   :  { %4215 = vmatmul.mubr.msk.f32.vlgmr.msra.gmra.mrb[16].mxu0 %vm99_vm0, %v88_v2 }
 0xaa0   :  { %4217 = vmatprep.mubr.msk.f32.mxu0 %vm99_vm0, %v89_v15 }
 0xaa1   :  { %v4670_v7 = vpop.eup %4669 }
 0xaa2   :  { %v1768_v11 = vmul.f32 %v4670_v7, %v1752_v42 }
 0xaa3   :  { %4218 = vmatmul.mubr.msk.f32.gmra.mrb[18].mxu0 %vm99_vm0, %v90_v16 }
 0xaa4   :  { %v1774_v12 = vmul.f32 %v1772_v30, %v1768_v11  ;;  %4238 = vmatprep.mubr.msk.f32.mxu0 %vm4813_vm1, %v4812_v9 }
 0xaa6   :  { %v5238_v13 = vadd.f32 %v1778_v34, %v1774_v12 }
 0xaa8   :  { %4204 = vmatmul.mubr.msk.f32.vlgmr.msra.gmra.mrb[22].mxu1 %vm99_vm0, %v5238_v13 }
 0xaa9   :  { %4224 = vmatprep.mubr.msk.f32.mxu1 %vm4813_vm1, %v4812_v9 }
 0xb72   :  { %v4216_v18 = vpop.f32.mrb[16].mxu0 }
 0xb73   :  { %v1960_v6 = vpop.f32.mrb[17].mxu0 }
 0xb74   :  { %v5254_v56 = vpack.i.bf16 %v4216_v18, %v1960_v6  ;;  %v4421_v19 = vpack.c.bf16 %v4216_v18, %v1960_v6 }
 0xb76   :  { %4561 = vrot.lane.b32.xlu0 %v5254_v56, %s4819_s12  ;;  %4556 = vrot.lane.b32.xlu1 %v5254_v56, %s4814_s3  ;;  %v5293_v34 = vpop.f32.mrb[18].mxu0 }
 0xb77   :  { %4423 = vmatpush3.bf16.xpose.msk.msra.mxu1 %vm5258_vm5, %v4421_v19  ;;  %v5295_v35 = vpop.f32.mrb[19].mxu0 }
 0xb78   :  { %4424 = vmatprep.subr.bf16.mxu1 %v4826_v26  ;;  %v5299_v8 = vpack.i.bf16 %v5293_v34, %v5295_v35  ;;  %v4455_v38 = vpack.c.bf16 %v5293_v34, %v5295_v35 }
 0xb7b   :  { %v5269_v22 = vpop.f32.mrb[22].mxu1 }
 0xb7c   :  { %v5271_v23 = vpop.f32.mrb[23].mxu1 }
 0xb7d   :  { %2149 = vrot.lane.b32.xlu1 %v5271_v23, %s4814_s3 }
 0xb7e   :  { %4225 = vmatmul.mubr.msk.f32.vlgmr.msra.gmra.mrb[24].mxu1 %vm184_vm2, %v5271_v23 }
 0xb7f   :  { %4231 = vmatprep.mubr.msk.f32.mxu1 %vm4813_vm1, %v4812_v9 }
 0xb81   :  { %2322 = vrot.lane.b32.xlu1 %v5271_v23, %s4819_s12 }
 0xbe8   :  { %v4557_v24 = vpop.permute.xlu1 %4556  ;;  %v4562_v28 = vpop.permute.xlu0 %4561 }
 0xbe9   :  { %v4559_v25 = vunpack.i.h.bf16 %v4557_v24  ;;  %v4558_v20 = vunpack.i.l.bf16 %v4557_v24  ;;  %v4564_v29 = vunpack.i.h.bf16 %v4562_v28  ;;  %v4563_v30 = vunpack.i.l.bf16 %v4562_v28 }
 0xbeb   :  { %v4428_v27 = vpack.c.bf16 %v4559_v25, %v4558_v20  ;;  %v4435_v31 = vpack.c.bf16 %v4564_v29, %v4563_v30 }
 0xbed   :  { %4430 = vmatpush3.bf16.xpose.msk.msra.mxu0 %vm5258_vm5, %v4428_v27 }
 0xbee   :  { %4434 = vmatprep.subr.bf16.mxu0 %v4826_v26 }
 0xbef   :  { %v2150_v32 = vpop.permute.xlu1 %2149 }
 0xbf3   :  { %v2323_v33 = vpop.permute.xlu1 %2322 }
 0xbf4   :  { %4239 = vmatmul.mubr.msk.f32.vlgmr.msra.gmra.mrb[20].mxu0 %vm184_vm2, %v2150_v32 }
 0xbf5   :  { %4437 = vmatpush3.bf16.xpose.msk.msra.mxu0 %vm5258_vm5, %v4435_v31  ;;  %4252 = vmatprep.mubr.msk.f32.mxu0 %vm4813_vm1, %v4812_v9 }
 0xbf6   :  { %4445 = vmatprep.subr.bf16.mxu0 %v4826_v26 }
 0xbfc   :  { %4253 = vmatmul.mubr.msk.f32.vlgmr.msra.gmra.mrb[22].mxu0 %vm184_vm2, %v2323_v33 }
 0xbfd   :  { %4273 = vmatprep.mubr.msk.f32.mxu0 %vm4813_vm1, %v4812_v9 }
 0xc51   :  { %v2054_v40 = vpop.f32.mrb[24].mxu1 }
 0xc52   :  { %v2058_v41 = vmul.f32 0.17677669, %v2054_v40  ;;  %v4226_v42 = vpop.f32.mrb[25].mxu1 }
 0xc54   :  { %v2059_v43 = vsel %vm862_vm3, %v2058_v41, -inf }
 0xc55   :  { %2060 = vmax.xlane.f32.xlu0 %v2059_v43 }
 0xcc7   :  { %v2227_v45 = vpop.f32.mrb[20].mxu0 }
 0xcc8   :  { %v2231_v46 = vmul.f32 0.17677669, %v2227_v45  ;;  %v4240_v10 = vpop.f32.mrb[21].mxu0 }
 0xcca   :  { %v2232_v48 = vsel %vm862_vm3, %v2231_v46, -inf }
 0xccb   :  { %2233 = vmax.xlane.f32.xlu1 %v2232_v48 }
 0xccf   :  { %v2400_v50 = vpop.f32.mrb[22].mxu0 }
 0xcd0   :  { %v2404_v51 = vmul.f32 0.17677669, %v2400_v50  ;;  %v4254_v52 = vpop.f32.mrb[23].mxu0 }
 0xcd2   :  { %v2405_v54 = vsel %vm862_vm3, %v2404_v51, -inf }
 0xcd3   :  { %2406 = vmax.xlane.f32.xlu0 %v2405_v54 }
 0xcdc   :  { %4566 = vrot.lane.b32.xlu1 %v5254_v56, %s4815_s17 }
 0xce2   :  { %v2061_v55 = vpop.xlane.xlu0 %2060 }
 0xce3   :  { %v2062_v57 = vsub.f32 %v2058_v41, %v2061_v55 }
 0xce5   :  { %v2063_v58 = vmul.f32 1.442695, %v2062_v57 }
 0xce7   :  { %4671 = vpow2.f32 %v2063_v58 }
 0xcf1   :  { %v4672_v59 = vpop.eup %4671 }
 0xcf2   :  { %v2065_v61 = vsel %vm862_vm3, %v4672_v59, 0.0 }
 0xcf3   :  { %2066 = vadd.xlane.f32.xlu0 %v2065_v61 }
 0xd58   :  { %v2234_v63 = vpop.xlane.xlu1 %2233 }
 0xd59   :  { %v2235_v0 = vsub.f32 %v2231_v46, %v2234_v63 }
 0xd5b   :  { %v2236_v1 = vmul.f32 1.442695, %v2235_v0 }
 0xd5c   :  { %v4567_v3 = vpop.permute.xlu1 %4566 }
 0xd5d   :  { %4673 = vpow2.f32 %v2236_v1  ;;  %v4569_v2 = vunpack.i.h.bf16 %v4567_v3  ;;  %v4568_v7 = vunpack.i.l.bf16 %v4567_v3 }
 0xd5f   :  { %v4425_v11 = vpack.c.bf16 %v4569_v2, %v4568_v7 }
 0xd60   :  { %v2407_v12 = vpop.xlane.xlu0 %2406 }
 0xd61   :  { %v2408_v15 = vsub.f32 %v2404_v51, %v2407_v12  ;;  %4426 = vmatpush3.bf16.msra.mxu1 %v4425_v11 }
 0xd62   :  { %4431 = vmatprep.subr.bf16.mxu1 %v4826_v26 }
 0xd63   :  { %v2409_v16 = vmul.f32 1.442695, %v2408_v15 }
 0xd65   :  { %4675 = vpow2.f32 %v2409_v16 }
 0xd67   :  { %v4674_v18 = vpop.eup %4673 }
 0xd68   :  { %v2238_v6 = vsel %vm862_vm3, %v4674_v18, 0.0 }
 0xd69   :  { %2239 = vadd.xlane.f32.xlu1 %v2238_v6 }
 0xd6f   :  { %v4676_v19 = vpop.eup %4675 }
 0xd70   :  { %v2411_v24 = vsel %vm862_vm3, %v4676_v19, 0.0 }
 0xd71   :  { %2412 = vadd.xlane.f32.xlu0 %v2411_v24 }
 0xd7a   :  { %4576 = vrot.lane.b32.xlu1 %v5254_v56, %s4816_s23 }
 0xd7e   :  { %4581 = vrot.lane.b32.xlu1 %v5254_v56, %s4820_s25 }
 0xd80   :  { %v2067_v25 = vpop.xlane.xlu0 %2066 }
 0xd81   :  { %4677 = vrcp.f32 %v2067_v25 }
 0xd87   :  { %4571 = vrot.lane.b32.xlu0 %v5254_v56, %s4817_s24 }
 0xd8b   :  { %v4678_v20 = vpop.eup %4677  ;;  %2495 = vrot.lane.b32.xlu0 %v5271_v23, %s4820_s25 }
 0xd8c   :  { %v5320_v27 = vmul.f32 %v4678_v20, %v4672_v59 }
 0xd8e   :  { %4232 = vmatmul.mubr.msk.f32.vlgmr.msra.gmra.mrb[26].mxu1 %vm862_vm3, %v5320_v27 }
 0xd8f   :  { %4586 = vrot.lane.b32.xlu0 %v5299_v8, %s4814_s3  ;;  %4245 = vmatprep.mubr.msk.f32.mxu1 %vm4813_vm1, %v4812_v9 }
 0xd93   :  { %2951 = vrot.lane.b32.xlu0 %v5269_v22, %s4814_s3 }
 0xdf6   :  { %v2240_v28 = vpop.xlane.xlu1 %2239 }
 0xdf7   :  { %4679 = vrcp.f32 %v2240_v28 }
 0xdfa   :  { %v4577_v30 = vpop.permute.xlu1 %4576 }
 0xdfb   :  { %v4579_v40 = vunpack.i.h.bf16 %v4577_v30  ;;  %v4578_v41 = vunpack.i.l.bf16 %v4577_v30 }
 0xdfd   :  { %v4439_v46 = vpack.c.bf16 %v4579_v40, %v4578_v41 }
 0xdfe   :  { %v2413_v29 = vpop.xlane.xlu0 %2412  ;;  %v4582_v10 = vpop.permute.xlu1 %4581 }
 0xdff   :  { %4681 = vrcp.f32 %v2413_v29  ;;  %v4584_v50 = vunpack.i.h.bf16 %v4582_v10  ;;  %v4583_v51 = vunpack.i.l.bf16 %v4582_v10 }
 0xe01   :  { %v4680_v33 = vpop.eup %4679  ;;  %v4442_v52 = vpack.c.bf16 %v4584_v50, %v4583_v51 }
 0xe02   :  { %v4572_v23 = vpop.permute.xlu0 %4571  ;;  %v5330_v43 = vmul.f32 %v4680_v33, %v4674_v18 }
 0xe03   :  { %v4574_v31 = vunpack.i.h.bf16 %v4572_v23  ;;  %v4573_v32 = vunpack.i.l.bf16 %v4572_v23 }
 0xe05   :  { %v4432_v42 = vpack.c.bf16 %v4574_v31, %v4573_v32 }
 0xe06   :  { %v2496_v54 = vpop.permute.xlu0 %2495 }
 0xe07   :  { %4433 = vmatpush3.bf16.msra.mxu1 %v4432_v42 }
 0xe08   :  { %4438 = vmatprep.subr.bf16.mxu1 %v4826_v26 }
 0xe09   :  { %v4682_v45 = vpop.eup %4681 }
 0xe0a   :  { %4246 = vmatmul.mubr.msk.f32.vlgmr.msra.gmra.mrb[28].mxu1 %vm862_vm3, %v5330_v43  ;;  %v5337_v48 = vmul.f32 %v4682_v45, %v4676_v19  ;;  %v4587_v55 = vpop.permute.xlu0 %4586 }
 0xe0b   :  { %4440 = vmatpush3.bf16.msra.mxu1 %v4439_v46  ;;  %4259 = vmatprep.mubr.msk.f32.mxu1 %vm4813_vm1, %v4812_v9  ;;  %v4589_v57 = vunpack.i.h.bf16 %v4587_v55  ;;  %v4588_v58 = vunpack.i.l.bf16 %v4587_v55 }
 0xe0c   :  { %4441 = vmatprep.subr.bf16.mxu1 %v4826_v26 }
 0xe0d   :  { %v4462_v59 = vpack.c.bf16 %v4589_v57, %v4588_v58 }
 0xe0e   :  { %4260 = vmatmul.mubr.msk.f32.vlgmr.msra.gmra.mrb[30].mxu1 %vm862_vm3, %v5337_v48  ;;  %v2952_v34 = vpop.permute.xlu0 %2951 }
 0xe0f   :  { %4266 = vmatprep.mubr.msk.f32.mxu1 %vm4813_vm1, %v4812_v9 }
 0xe14   :  { %4444 = vmatpush3.bf16.xpose.msk.msra.mxu1 %vm5258_vm5, %v4442_v52 }
 0xe15   :  { %4454 = vmatprep.subr.bf16.mxu1 %v4826_v26 }
 0xe1b   :  { %4267 = vmatmul.mubr.msk.f32.vlgmr.msra.gmra.mrb[32].mxu1 %vm184_vm2, %v2496_v54 }
 0xe1c   :  { %4457 = vmatpush3.bf16.xpose.msk.msra.mxu1 %vm5258_vm5, %v4455_v38  ;;  %4291 = vmatprep.mubr.msk.f32.mxu1 %vm4813_vm1, %v4812_v9 }
 0xe1d   :  { %4461 = vmatprep.subr.bf16.mxu1 %v4826_v26 }
 0xe23   :  { %4292 = vmatmul.mubr.msk.f32.vlgmr.msra.gmra.mrb[34].mxu1 %vm184_vm2, %v5269_v22 }
 0xe24   :  { %4464 = vmatpush3.bf16.xpose.msk.msra.mxu1 %vm5258_vm5, %v4462_v59  ;;  %4305 = vmatprep.mubr.msk.f32.mxu1 %vm4813_vm1, %v4812_v9 }
 0xe25   :  { %4472 = vmatprep.subr.bf16.mxu1 %v4826_v26 }
 0xe2b   :  { %4306 = vmatmul.mubr.msk.f32.vlgmr.msra.gmra.mrb[36].mxu1 %vm184_vm2, %v2952_v34 }
 0xe2c   :  { %4326 = vmatprep.mubr.msk.f32.mxu1 %vm4813_vm1, %v4812_v9 }
 0xe61   :  { %v5366_v35 = vpop.f32.mrb[26].mxu1 }
 0xe62   :  { %v4233_v38 = vpop.f32.mrb[27].mxu1 }
 0xedd   :  { %v2318_v61 = vpop.f32.mrb[28].mxu1 }
 0xede   :  { %v4247_v63 = vpop.f32.mrb[29].mxu1 }
 0xee1   :  { %v2491_v0 = vpop.f32.mrb[30].mxu1 }
 0xee2   :  { %v4261_v1 = vpop.f32.mrb[31].mxu1 }
 0xeee   :  { %v2573_v3 = vpop.f32.mrb[32].mxu1 }
 0xeef   :  { %v2577_v2 = vmul.f32 0.17677669, %v2573_v3  ;;  %v4268_v7 = vpop.f32.mrb[33].mxu1 }
 0xef1   :  { %v2578_v11 = vsel %vm862_vm3, %v2577_v2, -inf }
 0xef2   :  { %2579 = vmax.xlane.f32.xlu1 %v2578_v11 }
 0xef6   :  { %v2856_v12 = vpop.f32.mrb[34].mxu1 }
 0xef7   :  { %v4293_v15 = vpop.f32.mrb[35].mxu1  ;;  %v2860_v23 = vmul.f32 0.17677669, %v2856_v12 }
 0xef9   :  { %v2861_v33 = vsel %vm862_vm3, %v2860_v23, -inf }
 0xefe   :  { %v3029_v16 = vpop.f32.mrb[36].mxu1 }
 0xeff   :  { %v4307_v18 = vpop.f32.mrb[37].mxu1  ;;  %v3033_v32 = vmul.f32 0.17677669, %v3029_v16 }
 0xf03   :  { %4591 = vrot.lane.b32.xlu1 %v5254_v56, %s4818_s0  ;;  %v3034_v56 = vsel %vm862_vm3, %v3033_v32, -inf }
 0xf7f   :  { %v2580_v6 = vpop.xlane.xlu1 %2579 }
 0xf80   :  { %v2581_v19 = vsub.f32 %v2577_v2, %v2580_v6 }
 0xf82   :  { %v2582_v24 = vmul.f32 1.442695, %v2581_v19 }
 0xf83   :  { %v4592_v25 = vpop.permute.xlu1 %4591 }
 0xf84   :  { %4683 = vpow2.f32 %v2582_v24  ;;  %v4594_v20 = vunpack.i.h.bf16 %v4592_v25  ;;  %v4593_v28 = vunpack.i.l.bf16 %v4592_v25 }
 0xf86   :  { %v4446_v29 = vpack.c.bf16 %v4594_v20, %v4593_v28 }
 0xf88   :  { %4447 = vmatpush3.bf16.msra.mxu0 %v4446_v29 }
 0xf89   :  { %4448 = vmatprep.subr.bf16.mxu0 %v4826_v26 }
 0xf8e   :  { %v4684_v30 = vpop.eup %4683 }
 0xf8f   :  { %v2584_v31 = vsel %vm862_vm3, %v4684_v30, 0.0 }
 0xf90   :  { %2585 = vadd.xlane.f32.xlu0 %v2584_v31 }
 0xf94   :  { %2862 = vmax.xlane.f32.xlu0 %v2861_v33 }
 0xf98   :  { %3035 = vmax.xlane.f32.xlu0 %v3034_v56 }
 0xfae   :  { %4596 = vrot.lane.b32.xlu0 %v5213_v39, %s4824_s29 }
 0xfb2   :  { %4601 = vrot.lane.b32.xlu0 %v5224_v53, %s4824_s29 }
 0xfb6   :  { %2669 = vrot.lane.b32.xlu0 %v2318_v61, %s4809_s10 }
 0xfba   :  { %2673 = vrot.lane.b32.xlu0 %v2491_v0, %s4827_s11 }
 0xfbe   :  { %4606 = vrot.lane.b32.xlu0 %v5299_v8, %s4815_s17 }
0x101d   :  { %v2586_v40 = vpop.xlane.xlu0 %2585 }
0x101e   :  { %4685 = vrcp.f32 %v2586_v40 }
0x1021   :  { %v2863_v41 = vpop.xlane.xlu0 %2862 }
0x1022   :  { %v2864_v42 = vsub.f32 %v2860_v23, %v2863_v41 }
0x1024   :  { %v2865_v45 = vmul.f32 1.442695, %v2864_v42 }
0x1025   :  { %v3036_v46 = vpop.xlane.xlu0 %3035 }
0x1026   :  { %4687 = vpow2.f32 %v2865_v45  ;;  %v3037_v10 = vsub.f32 %v3033_v32, %v3036_v46 }
0x1028   :  { %v4686_v50 = vpop.eup %4685  ;;  %v3038_v39 = vmul.f32 1.442695, %v3037_v10 }
0x1029   :  { %v5383_v51 = vmul.f32 %v4686_v50, %v4684_v30  ;;  %v4597_v53 = vpop.permute.xlu0 %4596 }
0x102a   :  { %4689 = vpow2.f32 %v3038_v39  ;;  %v4599_v52 = vunpack.i.h.bf16 %v4597_v53  ;;  %v4598_v54 = vunpack.i.l.bf16 %v4597_v53 }
0x102b   :  { %4274 = vmatmul.mubr.msk.f32.vlgmr.msra.gmra.mrb[24].mxu0 %vm862_vm3, %v5383_v51 }
0x102c   :  { %v5387_v55 = vpack.c.bf16 %v4599_v52, %v4598_v54  ;;  %4284 = vmatprep.mubr.msk.f32.mxu0 %vm4813_vm1, %v4812_v9 }
0x102d   :  { %v4602_v57 = vpop.permute.xlu0 %4601 }
0x102e   :  { %v4604_v58 = vunpack.i.h.bf16 %v4602_v57  ;;  %v4603_v59 = vunpack.i.l.bf16 %v4602_v57  ;;  %4450 = vmatpush3.bf16.msra.mxu0 %v5387_v55 }
0x102f   :  { %4451 = vmatprep.subr.bf16.mxu0 %v4826_v26 }
0x1030   :  { %v4688_v34 = vpop.eup %4687  ;;  %v5393_v38 = vpack.c.bf16 %v4604_v58, %v4603_v59 }
0x1031   :  { %v2867_v61 = vsel %vm862_vm3, %v4688_v34, 0.0  ;;  %v2670_v2 = vpop.permute.xlu0 %2669 }
0x1032   :  { %2868 = vadd.xlane.f32.xlu0 %v2867_v61  ;;  %4453 = vmatpush3.bf16.msra.mxu0 %v5393_v38  ;;  %v2680_v19 = vsel %vm184_vm2, %v5366_v35, %v2670_v2 }
0x1033   :  { %4458 = vmatprep.subr.bf16.mxu0 %v4826_v26 }
0x1034   :  { %v4690_v63 = vpop.eup %4689 }
0x1035   :  { %v3040_v0 = vsel %vm862_vm3, %v4690_v63, 0.0  ;;  %v2674_v7 = vpop.permute.xlu0 %2673 }
0x1036   :  { %3041 = vadd.xlane.f32.xlu1 %v3040_v0  ;;  %v2681_v24 = vsel %vm862_vm3, %v2680_v19, %v2674_v7 }
0x1039   :  { %v4607_v11 = vpop.permute.xlu0 %4606 }
0x103a   :  { %v4609_v16 = vunpack.i.h.bf16 %v4607_v11  ;;  %v4608_v18 = vunpack.i.l.bf16 %v4607_v11 }
0x103c   :  { %v4459_v28 = vpack.c.bf16 %v4609_v16, %v4608_v18 }
0x1048   :  { %4611 = vrot.lane.b32.xlu0 %v5299_v8, %s4817_s24 }
0x104c   :  { %4616 = vrot.lane.b32.xlu0 %v5299_v8, %s4819_s12 }
0x1050   :  { %3124 = vrot.lane.b32.xlu0 %v5269_v22, %s4819_s12 }
0x10bf   :  { %v2869_v12 = vpop.xlane.xlu0 %2868 }
0x10c0   :  { %4691 = vrcp.f32 %v2869_v12 }
0x10c3   :  { %v3042_v15 = vpop.xlane.xlu1 %3041  ;;  %v4612_v6 = vpop.permute.xlu0 %4611 }
0x10c4   :  { %4693 = vrcp.f32 %v3042_v15  ;;  %v4614_v29 = vunpack.i.h.bf16 %v4612_v6  ;;  %v4613_v30 = vunpack.i.l.bf16 %v4612_v6 }
0x10c6   :  { %v4466_v32 = vpack.c.bf16 %v4614_v29, %v4613_v30 }
0x10c7   :  { %v4617_v33 = vpop.permute.xlu0 %4616 }
0x10c8   :  { %v4619_v40 = vunpack.i.h.bf16 %v4617_v33  ;;  %v4618_v41 = vunpack.i.l.bf16 %v4617_v33 }
0x10ca   :  { %v4692_v20 = vpop.eup %4691  ;;  %v4469_v42 = vpack.c.bf16 %v4619_v40, %v4618_v41 }
0x10cb   :  { %v5413_v31 = vmul.f32 %v4692_v20, %v4688_v34  ;;  %v3125_v45 = vpop.permute.xlu0 %3124 }
0x10ce   :  { %v4694_v35 = vpop.eup %4693 }
0x10cf   :  { %v5420_v56 = vmul.f32 %v4694_v35, %v4690_v63 }
0x10fe   :  { %v2664_v1 = vpop.f32.mrb[24].mxu0 }
0x10ff   :  { %2677 = vrot.lane.b32.xlu1 %v2664_v1, %s4828_s13  ;;  %v4275_v3 = vpop.f32.mrb[25].mxu0 }
0x1171   :  { %v2678_v25 = vpop.permute.xlu1 %2677 }
0x1172   :  { %v2682_v23 = vsel %vm864_vm4, %v2681_v24, %v2678_v25 }
0x1173   :  { %4285 = vmatmul.mubr.msk.f32.vlgmr.msra.gmra.mrb[26].mxu0 %vm99_vm0, %v2682_v23 }
0x1174   :  { %4460 = vmatpush3.bf16.msra.mxu0 %v4459_v28  ;;  %4298 = vmatprep.mubr.msk.f32.mxu0 %vm4813_vm1, %v4812_v9 }
0x1175   :  { %4465 = vmatprep.subr.bf16.mxu0 %v4826_v26 }
0x1177   :  { %4299 = vmatmul.mubr.msk.f32.vlgmr.msra.gmra.mrb[28].mxu0 %vm862_vm3, %v5413_v31 }
0x1178   :  { %4467 = vmatpush3.bf16.msra.mxu0 %v4466_v32  ;;  %4312 = vmatprep.mubr.msk.f32.mxu0 %vm4813_vm1, %v4812_v9  ;;  %v3575_v32 = vrot.slane %v5186_v62, %v3574_v21  ;;  %v3617_v21 = vld [vmem:[#allocation6 + $0x8] sm:$0xff] }
0x1179   :  { %4468 = vmatprep.subr.bf16.mxu0 %v4826_v26 }
0x117b   :  { %4313 = vmatmul.mubr.msk.f32.vlgmr.msra.gmra.mrb[30].mxu0 %vm862_vm3, %v5420_v56 }
0x117c   :  { %4319 = vmatprep.mubr.msk.f32.mxu0 %vm4813_vm1, %v4812_v9 }
0x1181   :  { %4471 = vmatpush3.bf16.xpose.msk.msra.mxu0 %vm5258_vm5, %v4469_v42 }
0x1182   :  { %4479 = vmatprep.subr.bf16.mxu0 %v4826_v26 }
0x1188   :  { %4320 = vmatmul.mubr.msk.f32.vlgmr.msra.gmra.mrb[32].mxu0 %vm184_vm2, %v3125_v45 }
0x1189   :  { %4340 = vmatprep.mubr.msk.f32.mxu0 %vm4813_vm1, %v4812_v9 }
0x1246   :  { %v2764_v46 = vpop.f32.mrb[26].mxu0 }
0x1247   :  { %v4286_v10 = vpop.f32.mrb[27].mxu0  ;;  %v3570_v35 = vadd.f32 %v2764_v46, %v5203_v37 }
0x1249   :  { %v3576_v33 = vadd.f32 %v3575_v32, %v3570_v35 }
0x124a   :  { %v5433_v50 = vpop.f32.mrb[28].mxu0 }
0x124b   :  { %v4300_v39 = vpop.f32.mrb[29].mxu0  ;;  %v3578_v40 = vsel %vm99_vm0, %v3576_v33, 0.0 }
0x124e   :  { %v3120_v53 = vpop.f32.mrb[30].mxu0 }
0x124f   :  { %v4314_v52 = vpop.f32.mrb[31].mxu0 }
0x125b   :  { %v3202_v54 = vpop.f32.mrb[32].mxu0 }
0x125c   :  { %v3206_v57 = vmul.f32 0.17677669, %v3202_v54  ;;  %v4321_v58 = vpop.f32.mrb[33].mxu0 }
0x125e   :  { %v3207_v59 = vsel %vm862_vm3, %v3206_v57, -inf }
0x125f   :  { %3208 = vmax.xlane.f32.xlu0 %v3207_v59 }
0x1275   :  { %4621 = vrot.lane.b32.xlu0 %v5299_v8, %s4816_s23 }
0x1279   :  { %3297 = vrot.lane.b32.xlu0 %v5269_v22, %s4820_s25 }
0x12ec   :  { %v3209_v34 = vpop.xlane.xlu0 %3208 }
0x12ed   :  { %v3210_v61 = vsub.f32 %v3206_v57, %v3209_v34 }
0x12ef   :  { %v3211_v63 = vmul.f32 1.442695, %v3210_v61 }
0x12f0   :  { %v4622_v0 = vpop.permute.xlu0 %4621 }
0x12f1   :  { %4695 = vpow2.f32 %v3211_v63  ;;  %v4624_v1 = vunpack.i.h.bf16 %v4622_v0  ;;  %v4623_v3 = vunpack.i.l.bf16 %v4622_v0 }
0x12f3   :  { %v4473_v2 = vpack.c.bf16 %v4624_v1, %v4623_v3 }
0x12f4   :  { %v3298_v24 = vpop.permute.xlu0 %3297 }
0x12f5   :  { %4474 = vmatpush3.bf16.msra.mxu1 %v4473_v2 }
0x12f6   :  { %4475 = vmatprep.subr.bf16.mxu1 %v4826_v26 }
0x12fb   :  { %v4696_v7 = vpop.eup %4695 }
0x12fc   :  { %v3213_v11 = vsel %vm862_vm3, %v4696_v7, 0.0 }
0x12fd   :  { %3214 = vadd.xlane.f32.xlu1 %v3213_v11 }
0x130e   :  { %4626 = vrot.lane.b32.xlu1 %v5299_v8, %s4820_s25 }
0x138a   :  { %v3215_v12 = vpop.xlane.xlu1 %3214 }
0x138b   :  { %4697 = vrcp.f32 %v3215_v12 }
0x138e   :  { %v4627_v22 = vpop.permute.xlu1 %4626 }
0x138f   :  { %v4629_v15 = vunpack.i.h.bf16 %v4627_v22  ;;  %v4628_v16 = vunpack.i.l.bf16 %v4627_v22 }
0x1391   :  { %v4476_v19 = vpack.c.bf16 %v4629_v15, %v4628_v16 }
0x1395   :  { %v4698_v18 = vpop.eup %4697 }
0x1396   :  { %v5444_v6 = vmul.f32 %v4698_v18, %v4696_v7 }
0x1398   :  { %4327 = vmatmul.mubr.msk.f32.vlgmr.msra.gmra.mrb[38].mxu1 %vm862_vm3, %v5444_v6 }
0x1399   :  { %4478 = vmatpush3.bf16.xpose.msk.msra.mxu1 %vm5258_vm5, %v4476_v19  ;;  %4333 = vmatprep.mubr.msk.f32.mxu1 %vm4813_vm1, %v4812_v9 }
0x13a0   :  { %4334 = vmatmul.mubr.msk.f32.vlgmr.msra.gmra.mrb[40].mxu1 %vm184_vm2, %v3298_v24 }
0x146b   :  { %v3293_v25 = vpop.f32.mrb[38].mxu1 }
0x146c   :  { %v4328_v20 = vpop.f32.mrb[39].mxu1 }
0x1473   :  { %v3375_v28 = vpop.f32.mrb[40].mxu1 }
0x1474   :  { %v3379_v29 = vmul.f32 0.17677669, %v3375_v28  ;;  %v4335_v30 = vpop.f32.mrb[41].mxu1 }
0x1476   :  { %v3380_v23 = vsel %vm862_vm3, %v3379_v29, -inf }
0x1477   :  { %3381 = vmax.xlane.f32.xlu1 %v3380_v23  ;;  %v3616_v23 = vld [vmem:[#allocation6] sm:$0xff] }
0x1478   :  { %v4488_v35 = vpack.c.bf16 %v3617_v21, %v3616_v23 }
0x147a   :  { %4489 = vmatprep.subr.bf16.mxu1 %v4488_v35 }
0x147b   :  { %4491 = vmatpush3.bf16.msra.mxu1 %v4488_v35 }
0x1488   :  { %3471 = vrot.lane.b32.xlu1 %v3120_v53, %s4809_s10 }
0x148c   :  { %3475 = vrot.lane.b32.xlu1 %v3293_v25, %s4827_s11 }
0x14b0   :  { %3579 = vadd.xlane.f32.xlu1 %v3578_v40 }
0x1504   :  { %v3382_v41 = vpop.xlane.xlu1 %3381 }
0x1505   :  { %v3383_v42 = vsub.f32 %v3379_v29, %v3382_v41  ;;  %v3714_v41 = vld [vmem:[%s5582_s6 + $0x28] sm:$0xff] }
0x1507   :  { %v3384_v45 = vmul.f32 1.442695, %v3383_v42 }
0x1508   :  { %v3472_v34 = vpop.permute.xlu1 %3471 }
0x1509   :  { %4699 = vpow2.f32 %v3384_v45  ;;  %v3482_v63 = vsel %vm184_vm2, %v5433_v50, %v3472_v34 }
0x150c   :  { %v3476_v61 = vpop.permute.xlu1 %3475 }
0x150d   :  { %v3483_v0 = vsel %vm862_vm3, %v3482_v63, %v3476_v61 }
0x1513   :  { %v4700_v10 = vpop.eup %4699 }
0x1514   :  { %v3386_v39 = vsel %vm862_vm3, %v4700_v10, 0.0 }
0x1515   :  { %3387 = vadd.xlane.f32.xlu0 %v3386_v39 }
0x152b   :  { %4631 = vrot.lane.b32.xlu0 %v5299_v8, %s4818_s0 }
0x15a2   :  { %v3388_v53 = vpop.xlane.xlu0 %3387 }
0x15a3   :  { %4701 = vrcp.f32 %v3388_v53 }
0x15a6   :  { %v4632_v37 = vpop.permute.xlu0 %4631 }
0x15a7   :  { %v4634_v46 = vunpack.i.h.bf16 %v4632_v37  ;;  %v4633_v52 = vunpack.i.l.bf16 %v4632_v37 }
0x15a9   :  { %v4480_v54 = vpack.c.bf16 %v4634_v46, %v4633_v52 }
0x15ab   :  { %4481 = vmatpush3.bf16.msra.mxu0 %v4480_v54  ;;  %v3715_v54 = vld [vmem:[%s5582_s6 + $0x30] sm:$0xff] }
0x15ac   :  { %4482 = vmatprep.subr.bf16.mxu0 %v4826_v26 }
0x15ad   :  { %v4702_v57 = vpop.eup %4701 }
0x15ae   :  { %v3390_v58 = vmul.f32 %v4702_v57, %v4700_v10  ;;  %v3716_v57 = vld [vmem:[%s5582_s6 + $0x38] sm:$0xff] }
0x15b0   :  { %4341 = vmatmul.mubr.msk.f32.vlgmr.msra.gmra.mrb[34].mxu0 %vm862_vm3, %v3390_v58 }
0x15b1   :  { %4484 = vmatpush3.bf16.msra.mxu0 %v5387_v55  ;;  %4351 = vmatprep.mubr.msk.f32.mxu0 %vm4813_vm1, %v4812_v9  ;;  %v3580_v9 = vpop.xlane.xlu1 %3579 }
0x15b2   :  { %4485 = vmatprep.subr.bf16.mxu0 %v4826_v26  ;;  %v3584_v26 = vmul.f32 0.03125, %v3580_v9  ;;  %v4711_v9 = vld [vmem:[#allocation7] sm:$0xff] }
0x15b5   :  { %4487 = vmatpush3.bf16.msra.mxu0 %v5393_v38  ;;  %v3586_v38 = vsub.f32 %v3576_v33, %v3584_v26 }
0x15b7   :  { %v3588_v22 = vmul.f32 %v3586_v38, %v3586_v38 }
0x15b9   :  { %v3590_v50 = vsel %vm99_vm0, %v3588_v22, 0.0 }
0x1683   :  { %v3466_v8 = vpop.f32.mrb[34].mxu0 }
0x1684   :  { %3479 = vrot.lane.b32.xlu0 %v3466_v8, %s4828_s13  ;;  %v4342_v59 = vpop.f32.mrb[35].mxu0  ;;  %v3940_v8 = vld [vmem:[%s5584_s8] ss:$0 sm:$0xff] }
0x16f6   :  { %v3480_v1 = vpop.permute.xlu0 %3479 }
0x16f7   :  { %v3484_v55 = vsel %vm864_vm4, %v3483_v0, %v3480_v1 }
0x16f8   :  { %4352 = vmatmul.mubr.msk.f32.vlgmr.msra.gmra.mrb[36].mxu0 %vm99_vm0, %v3484_v55  ;;  %v3719_v55 = vsub.s32 2, %v5183_v60 }
0x16fa   :  { %v3720_v26 = vrot.slane %v4711_v9, %v3719_v55 }
0x17cb   :  { %v3554_v3 = vpop.f32.mrb[36].mxu0 }
0x17cc   :  { %v3571_v2 = vadd.f32 %v3554_v3, %v5238_v13  ;;  %v4353_v7 = vpop.f32.mrb[37].mxu0 }
0x17ce   :  { %v3577_v11 = vadd.f32 %v3575_v32, %v3571_v2  ;;  %v3619_v32 = vld [vmem:[#allocation6 + $0x18] sm:$0xff] }
0x17d0   :  { %v3581_v12 = vsel %vm99_vm0, %v3577_v11, 0.0 }
0x17d1   :  { %3582 = vadd.xlane.f32.xlu0 %v3581_v12 }
0x17d5   :  { %3591 = vadd.xlane.f32.xlu0 %v3590_v50 }
0x17eb   :  { %955 = vrot.lane.b32.xlu0 %v5066_v5, %s4809_s10 }
0x17ef   :  { %1722 = vrot.lane.b32.xlu0 %v5163_v44, %s4809_s10 }
0x17f3   :  { %1728 = vrot.lane.b32.xlu0 %v5176_v49, %s4828_s13  ;;  %v3606_v49 = vsub.s32 5, %v5183_v60 }
0x17f5   :  { %v3607_v25 = vrot.slane %v5186_v62, %v3606_v49 }
0x17f7   :  { %2771 = vrot.lane.b32.xlu0 %v5337_v48, %s4824_s29  ;;  %v3612_v48 = vsub.s32 6, %v5183_v60 }
0x17f9   :  { %v3613_v28 = vrot.slane %v5186_v62, %v3612_v48  ;;  %v3618_v62 = vld [vmem:[#allocation6 + $0x10] sm:$0xff] }
0x17fb   :  { %3558 = vrot.lane.b32.xlu0 %v5420_v56, %s4827_s11 }
0x17ff   :  { %3564 = vrot.lane.b32.xlu0 %v3390_v58, %s4823_s28  ;;  %v4508_v58 = vpack.c.bf16 %v3716_v57, %v3715_v54 }
0x185e   :  { %v3583_v13 = vpop.xlane.xlu0 %3582 }
0x185f   :  { %v3585_v15 = vmul.f32 0.03125, %v3583_v13 }
0x1861   :  { %v3587_v16 = vsub.f32 %v3577_v11, %v3585_v15 }
0x1862   :  { %v3592_v18 = vpop.xlane.xlu0 %3591 }
0x1863   :  { %v3596_v19 = vmul.f32 0.03125, %v3592_v18  ;;  %v3589_v5 = vmul.f32 %v3587_v16, %v3587_v16 }
0x1865   :  { %v3598_v24 = vadd.f32 1e-05, %v3596_v19  ;;  %v3593_v44 = vsel %vm99_vm0, %v3589_v5, 0.0 }
0x1866   :  { %3594 = vadd.xlane.f32.xlu1 %v3593_v44  ;;  %v956_v13 = vpop.permute.xlu0 %955 }
0x1867   :  { %4703 = vrsqrt.f32 %v3598_v24 }
0x1871   :  { %v4704_v56 = vpop.eup %4703 }
0x1872   :  { %v3602_v20 = vmul.f32 %v4704_v56, %v3586_v38 }
0x1874   :  { %v3608_v29 = vmul.f32 %v3607_v25, %v3602_v20 }
0x1876   :  { %v5495_v30 = vadd.f32 %v3613_v28, %v3608_v29 }
0x1877   :  { %958 = vrot.lane.b32.xlu1 %v5074_v14, %s4827_s11  ;;  %v4492_v14 = vpack.c.bf16 %v3619_v32, %v3618_v62 }
0x1878   :  { %4362 = vmatprep.mubr.msk.f32.mxu1 %vm99_vm0, %v5495_v30 }
0x1879   :  { %4493 = vmatprep.subr.bf16.mxu1 %v4492_v14 }
0x187a   :  { %4495 = vmatpush3.bf16.msra.mxu1 %v4492_v14 }
0x187b   :  { %961 = vrot.lane.b32.xlu1 %v5080_v17, %s4828_s13  ;;  %v3709_v17 = vld [vmem:[%s5582_s6] sm:$0xff] }
0x187f   :  { %1725 = vrot.lane.b32.xlu1 %v5169_v47, %s4827_s11  ;;  %v3710_v47 = vld [vmem:[%s5582_s6 + $0x8] sm:$0xff] }
0x1880   :  { %v4496_v33 = vpack.c.bf16 %v3710_v47, %v3709_v17 }
0x1882   :  { %4497 = vmatprep.subr.bf16.mxu0 %v4496_v33 }
0x1883   :  { %2768 = vrot.lane.b32.xlu1 %v5330_v43, %s4827_s11  ;;  %v3711_v43 = vld [vmem:[%s5582_s6 + $0x10] sm:$0xff]  ;;  %4499 = vmatpush3.bf16.msra.mxu0 %v4496_v33 }
0x1887   :  { %2774 = vrot.lane.b32.xlu1 %v5383_v51, %s4823_s28  ;;  %v3712_v51 = vld [vmem:[%s5582_s6 + $0x18] sm:$0xff] }
0x1888   :  { %v4500_v40 = vpack.c.bf16 %v3712_v51, %v3711_v43 }
0x188a   :  { %4501 = vmatprep.subr.bf16.mxu0 %v4500_v40 }
0x188b   :  { %3561 = vrot.lane.b32.xlu1 %v5444_v6, %s4824_s29  ;;  %v3713_v6 = vld [vmem:[%s5582_s6 + $0x20] sm:$0xff]  ;;  %4503 = vmatpush3.bf16.msra.mxu0 %v4500_v40  ;;  %v964_v40 = vsel %vm184_vm2, %v5060_v4, %v956_v13 }
0x188c   :  { %v4504_v42 = vpack.c.bf16 %v3714_v41, %v3713_v6 }
0x188e   :  { %4505 = vmatprep.subr.bf16.mxu0 %v4504_v42 }
0x188f   :  { %4507 = vmatpush3.bf16.msra.mxu0 %v4504_v42 }
0x1890   :  { %4509 = vmatprep.subr.bf16.mxu0 %v4508_v58 }
0x1893   :  { %4511 = vmatpush3.bf16.msra.mxu0 %v4508_v58 }
0x18f3   :  { %v3595_v45 = vpop.xlane.xlu1 %3594 }
0x18f4   :  { %v3597_v10 = vmul.f32 0.03125, %v3595_v45 }
0x18f6   :  { %v3599_v39 = vadd.f32 1e-05, %v3597_v10 }
0x18f7   :  { %v959_v15 = vpop.permute.xlu1 %958 }
0x18f8   :  { %4705 = vrsqrt.f32 %v3599_v39  ;;  %v965_v41 = vsel %vm862_vm3, %v964_v40, %v959_v15 }
0x18fb   :  { %v962_v18 = vpop.permute.xlu1 %961 }
0x18ff   :  { %v1726_v5 = vpop.permute.xlu1 %1725 }
0x1902   :  { %v4706_v53 = vpop.eup %4705 }
0x1903   :  { %v3603_v37 = vmul.f32 %v4706_v53, %v3587_v16  ;;  %v1723_v16 = vpop.permute.xlu0 %1722  ;;  %v2769_v44 = vpop.permute.xlu1 %2768 }
0x1904   :  { %v1731_v17 = vsel %vm184_vm2, %v5151_v36, %v1723_v16  ;;  %v2777_v43 = vsel %vm862_vm3, %v5320_v27, %v2769_v44  ;;  %v966_v27 = vsel %vm864_vm4, %v965_v41, %v962_v18 }
0x1905   :  { %v3609_v46 = vmul.f32 %v3607_v25, %v3603_v37  ;;  %v1732_v47 = vsel %vm862_vm3, %v1731_v17, %v1726_v5 }
0x1907   :  { %v3615_v52 = vadd.f32 %v3613_v28, %v3609_v46  ;;  %v1729_v19 = vpop.permute.xlu0 %1728  ;;  %v2775_v48 = vpop.permute.xlu1 %2774 }
0x1908   :  { %v1733_v33 = vsel %vm864_vm4, %v1732_v47, %v1729_v19 }
0x1909   :  { %4363 = vmatmul.mubr.msk.f32.vlgmr.msra.gmra.mrb[42].mxu1 %vm99_vm0, %v3615_v52 }
0x190b   :  { %v2772_v24 = vpop.permute.xlu0 %2771  ;;  %v3562_v56 = vpop.permute.xlu1 %3561 }
0x190c   :  { %v2778_v51 = vsel %vm99_vm0, %v2777_v43, %v2772_v24 }
0x190d   :  { %v2780_v6 = vsel %vm2779_vm7, %v2778_v51, %v2775_v48 }
0x190f   :  { %v3559_v49 = vpop.permute.xlu0 %3558 }
0x1910   :  { %v3567_v36 = vsel %vm862_vm3, %v5413_v31, %v3559_v49 }
0x1911   :  { %v3568_v42 = vsel %vm99_vm0, %v3567_v36, %v3562_v56 }
0x1913   :  { %v3565_v25 = vpop.permute.xlu0 %3564 }
0x1914   :  { %v3569_v45 = vsel %vm2779_vm7, %v3568_v42, %v3565_v25 }
0x19dc   :  { %v4364_v59 = vpop.f32.mrb[42].mxu1 }
0x19dd   :  { %v3704_v34 = vadd.f32 %v4364_v59, %v3940_v8  ;;  %v3698_v61 = vpop.f32.mrb[43].mxu1  ;;  %v3945_v59 = vld [vmem:[#allocation7 + $0x8] ss:$0 sm:$0xff] }
0x19de   :  { %v3699_v63 = vadd.f32 %v3940_v8, %v3698_v61 }
0x19df   :  { %v3708_v1 = vmax.f32 %v3704_v34, 0.0 }
0x19e0   :  { %v3707_v0 = vmax.f32 %v3699_v63, 0.0 }
0x19e2   :  { %4381 = vmatprep.mubr.msk.f32.mxu0 %vm3721_vm6, %v3707_v0 }
0x19e3   :  { %4382 = vmatmul.mubr.msk.f32.vlgmr.msra.gmra.mrb[38].mxu0 %vm3721_vm6, %v3708_v1 }
0x1ab6   :  { %v4383_v3 = vpop.f32.mrb[38].mxu0 }
0x1ab7   :  { %v3800_v38 = vadd.f32 %v4383_v3, %v3720_v26  ;;  %v3794_v2 = vpop.f32.mrb[39].mxu0 }
0x1ab8   :  { %v3795_v7 = vadd.f32 %v3794_v2, %v3720_v26 }
0x1ab9   :  { %v3804_v11 = vadd.f32 %v3800_v38, %v3615_v52  ;;  %v3833_v52 = vsub.s32 7, %v5183_v60 }
0x1aba   :  { %v3803_v12 = vadd.f32 %v3795_v7, %v5495_v30 }
0x1abb   :  { %v3808_v22 = vsel %vm99_vm0, %v3804_v11, 0.0  ;;  %v3834_v31 = vrot.slane %v4711_v9, %v3833_v52 }
0x1abc   :  { %3809 = vadd.xlane.f32.xlu0 %v3808_v22  ;;  %v3805_v50 = vsel %vm99_vm0, %v3803_v12, 0.0 }
0x1abd   :  { %3806 = vadd.xlane.f32.xlu1 %v3805_v50 }
0x1b49   :  { %v3810_v20 = vpop.xlane.xlu0 %3809 }
0x1b4a   :  { %v3812_v28 = vmul.f32 0.03125, %v3810_v20  ;;  %v3807_v29 = vpop.xlane.xlu1 %3806 }
0x1b4b   :  { %v3811_v30 = vmul.f32 0.03125, %v3807_v29 }
0x1b4c   :  { %v3814_v23 = vsub.f32 %v3804_v11, %v3812_v28 }
0x1b4d   :  { %v3813_v21 = vsub.f32 %v3803_v12, %v3811_v30 }
0x1b4e   :  { %v3816_v35 = vmul.f32 %v3814_v23, %v3814_v23 }
0x1b4f   :  { %v3815_v62 = vmul.f32 %v3813_v21, %v3813_v21 }
0x1b50   :  { %v3820_v32 = vsel %vm99_vm0, %v3816_v35, 0.0 }
0x1b51   :  { %3821 = vadd.xlane.f32.xlu1 %v3820_v32  ;;  %v3817_v14 = vsel %vm99_vm0, %v3815_v62, 0.0 }
0x1b52   :  { %3818 = vadd.xlane.f32.xlu0 %v3817_v14 }
0x1b62   :  { %3847 = vrot.lane.b32.xlu1 %v1733_v33, %s4824_s29 }
0x1b66   :  { %3853 = vrot.lane.b32.xlu1 %v2780_v6, %s4822_s27 }
0x1b68   :  { %3845 = vrot.lane.b32.xlu0 %v966_v27, %s4824_s29 }
0x1b6c   :  { %3855 = vrot.lane.b32.xlu0 %v3569_v45, %s4822_s27 }
0x1bde   :  { %v3822_v10 = vpop.xlane.xlu1 %3821 }
0x1bdf   :  { %v3824_v39 = vmul.f32 0.03125, %v3822_v10  ;;  %v3819_v4 = vpop.xlane.xlu0 %3818 }
0x1be0   :  { %v3823_v53 = vmul.f32 0.03125, %v3819_v4 }
0x1be1   :  { %v3826_v37 = vadd.f32 1e-05, %v3824_v39 }
0x1be2   :  { %v3825_v46 = vadd.f32 1e-05, %v3823_v53  ;;  %v3848_v34 = vpop.permute.xlu1 %3847 }
0x1be3   :  { %4707 = vrsqrt.f32 %v3826_v37  ;;  %v3846_v8 = vpop.permute.xlu0 %3845 }
0x1be4   :  { %4709 = vrsqrt.f32 %v3825_v46 }
0x1be6   :  { %v3854_v2 = vpop.permute.xlu1 %3853 }
0x1be7   :  { %v3856_v3 = vpop.permute.xlu0 %3855 }
0x1bed   :  { %v4708_v54 = vpop.eup %4707 }
0x1bee   :  { %v4710_v57 = vpop.eup %4709  ;;  %v3830_v58 = vmul.f32 %v4708_v54, %v3814_v23 }
0x1bef   :  { %v3829_v61 = vmul.f32 %v4710_v57, %v3813_v21 }
0x1bf0   :  { %v3836_v63 = vmul.f32 %v3834_v31, %v3830_v58 }
0x1bf1   :  { %v3835_v0 = vmul.f32 %v3834_v31, %v3829_v61 }
0x1bf2   :  { %v3842_v1 = vadd.f32 %v3945_v59, %v3836_v63 }
0x1bf3   :  { %v3841_v55 = vadd.f32 %v3945_v59, %v3835_v0 }
0x1bf4   :  { %v3860_v26 = vsel %vm99_vm0, %v3842_v1, %v3848_v34 }
0x1bf5   :  { %v3859_v38 = vsel %vm99_vm0, %v3841_v55, %v3846_v8  ;;  %v3862_v60 = vsel %vm3721_vm6, %v3860_v26, %v3856_v3 }
0x1bf6   :  { %v3861_v9 = vsel %vm3721_vm6, %v3859_v38, %v3854_v2  ;;  %3864 = vst [vmem:[%s5585_s9 + $0x8] sm:$0xff] %v3862_v60 }
0x1bf7   :  { %3863 = vst [vmem:[%s5585_s9] sm:$0xff] %v3861_v9 }
0x1bf8   :  { %3869 = vsyncpa [#allocation3], 1 }
0x1bf9   :  { %3870 = vsyncpa [#allocation5], 1 }
0x1bfa   :  { %3871 = vsyncpa [#allocation8], 1 }

</bundles_post_ra>
